<compile_context>
chip_gen: v6e
topology: v6e:2x2x1
jax: 0.10.0
libtpu: 0.0.40
codegen_flags: <defaults>
</compile_context>

<pallas_src>
import re
import math
import functools

import jax
import jax.numpy as jnp
from jax.experimental import pallas as pl
from jax.experimental.pallas import tpu as pltpu

EPS = 1e-5  # nn.LayerNorm default eps


def _vmem():
    return pl.BlockSpec(memory_space=pltpu.MemorySpace.VMEM)


def _layernorm(x, gamma, beta):
    mu = jnp.mean(x, axis=-1, keepdims=True)
    var = jnp.mean((x - mu) ** 2, axis=-1, keepdims=True)
    return (x - mu) * jax.lax.rsqrt(var + EPS) * gamma + beta


def _gelu(x):
    # TODO(synk): PyTorch F.gelu defaults to the exact erf GELU; tanh
    # approximation used since erf is not guaranteed to lower in Mosaic.
    c = math.sqrt(2.0 / math.pi)
    return 0.5 * x * (1.0 + jnp.tanh(c * (x + 0.044715 * x * x * x)))


# ------------------------------ fused kernel ------------------------------

def fused_forward_kernel(x_ref, wb_ref, p_ref, win_ref, bin_ref, wo_ref,
                         w1_ref, b1_ref, w2_ref, vec_ref, fin_ref,
                         out_ref, *, S, B, H, hd, L, HP):
    N = S * B
    bf16 = jnp.bfloat16
    scale = 1.0 / math.sqrt(hd)

    # ---- per-key linear encoders (VPU, width-2 contraction), all S keys ----
    x = x_ref[...]                        # (S, B, 2) inputs zero-padded to 2
    wb = wb_ref[...]                      # (S, 3, H): rows = w0, w1, bias
    enc = (x[:, :, 0:1] * wb[:, 0:1, :]
           + x[:, :, 1:2] * wb[:, 1:2, :]
           + wb[:, 2:3, :])               # (S, B, H)
    hidden = enc.reshape(N, H)            # (N, H), row = s*B + b

    p_mat = p_ref[...]                    # (H, H) bf16 block-diag head projector

    # TODO(synk): replace the static unroll with lax.fori_loop / an L-grid with
    # streamed per-layer weight BlockSpecs once L grows past ~2.
    for l in range(L):
        vec = vec_ref[l]                  # (6, H): g1, beta1, g2, beta2, bo, bb2
        g1, beta1 = vec[0:1], vec[1:2]
        g2, beta2 = vec[2:3], vec[3:4]
        bo, bb2 = vec[4:5], vec[5:6]

        # -------- self-attention block (norm_first) --------
        xn = _layernorm(hidden, g1, beta1)
        qkv = (jnp.dot(xn.astype(bf16), win_ref[l],
                       preferred_element_type=jnp.float32)
               + bin_ref[l])              # (N, 3H), single fused in_proj matmul
        q = qkv[:, 0:H].reshape(S, B, H) * scale
        k = qkv[:, H:2 * H].reshape(S, B, H)
        v = qkv[:, 2 * H:3 * H].reshape(S, B, H)

        # scores[j, i, b, lane] = scale * sum_{d in head(lane)} q[i,b,d]*k[j,b,d]
        # One batched MXU push for all (i, j) pairs; P replicates each head's
        # score across that head's hd lanes (lane-dense, no (N, nh) tensors).
        prod = q[None, :, :, :] * k[:, None, :, :]                 # (S, S, B, H)
        s_all = jnp.dot(prod.reshape(S * N, H).astype(bf16), p_mat,
                        preferred_element_type=jnp.float32
                        ).reshape(S, S, B, H)

        # softmax over the key axis j (tiny static S -> unrolled VPU ops)
        m = s_all[0]
        for j in range(1, S):
            m = jnp.maximum(m, s_all[j])
        e_list = [jnp.exp(s_all[j] - m) for j in range(S)]
        denom = e_list[0]
        for j in range(1, S):
            denom = denom + e_list[j]
        inv = pl.reciprocal(denom, approx=True)        # EUP slot
        inv = inv * (2.0 - denom * inv)                # one Newton refinement

        # context = (sum_j e_j * v_j) * inv  — pure VPU, weights already on lanes
        ctx = e_list[0] * v[0][None, :, :]
        for j in range(1, S):
            ctx = ctx + e_list[j] * v[j][None, :, :]
        attn = (ctx * inv).reshape(N, H)

        hidden = (hidden
                  + jnp.dot(attn.astype(bf16), wo_ref[l],
                            preferred_element_type=jnp.float32)
                  + bo)

        # -------- feed-forward block (norm_first) --------
        z = _layernorm(hidden, g2, beta2)
        h1 = jnp.dot(z.astype(bf16), w1_ref[l],
                     preferred_element_type=jnp.float32) + b1_ref[l]
        h1 = _gelu(h1)
        hidden = (hidden
                  + jnp.dot(h1.astype(bf16), w2_ref[l],
                            preferred_element_type=jnp.float32)
                  + bb2)

    # ---- final LayerNorm + mean over the sequence dim ----
    fin = fin_ref[...]                    # (2, H): gamma, beta
    xn = _layernorm(hidden, fin[0:1], fin[1:2])
    xn3 = xn.reshape(S, B, H)
    res = xn3[0]
    for s in range(1, S):
        res = res + xn3[s]
    res = res * (1.0 / S)                 # (B, H) f32

    if HP == H:
        out_ref[...] = res
    else:
        # Lane-dense writeback: embed (B, H) into (B, HP) via an exact f32
        # identity matmul so the store is a full unmasked vst tile.
        emb = (jax.lax.broadcasted_iota(jnp.int32, (H, HP), 0)
               == jax.lax.broadcasted_iota(jnp.int32, (H, HP), 1)
               ).astype(jnp.float32)
        out_ref[...] = jnp.dot(res, emb, preferred_element_type=jnp.float32)


# ------------------------------ parameters ------------------------------

def init_params(key, hidden_size, n_layers):
    H = hidden_size
    keys = iter(jax.random.split(key, 8 * (n_layers + 2)))

    def lin(in_dim, out_dim):
        # weights stored pre-transposed as (in, out) so kernels do x @ W
        w = jax.random.normal(next(keys), (in_dim, out_dim), jnp.float32) / math.sqrt(in_dim)
        b = jax.random.normal(next(keys), (1, out_dim), jnp.float32) * 0.01
        return w, b

    p = {}
    p['position_w'], p['position_b'] = lin(2, H)
    p['speed_w'], p['speed_b'] = lin(2, H)
    p['direction_w'], p['direction_b'] = lin(2, H)
    p['angular_speed_w'], p['angular_speed_b'] = lin(1, H)

    layers = []
    for _ in range(n_layers):
        lp = {}
        lp['w_in'], lp['b_in'] = lin(H, 3 * H)      # fused in_proj (q,k,v)
        lp['w_out'], lp['b_out'] = lin(H, H)        # out_proj
        lp['w_ff1'], lp['b_ff1'] = lin(H, 4 * H)    # linear1
        lp['w_ff2'], lp['b_ff2'] = lin(4 * H, H)    # linear2
        lp['g1'] = jnp.ones((1, H), jnp.float32)
        lp['beta1'] = jnp.zeros((1, H), jnp.float32)
        lp['g2'] = jnp.ones((1, H), jnp.float32)
        lp['beta2'] = jnp.zeros((1, H), jnp.float32)
        layers.append(lp)
    p['layers'] = layers
    p['g_final'] = jnp.ones((1, H), jnp.float32)
    p['b_final'] = jnp.zeros((1, H), jnp.float32)
    return p


# ------------------------------ forward ------------------------------

def world_transformer_encoder_forward(input_dict, params, *, hidden_size, n_heads):
    H = hidden_size
    nh = n_heads
    assert H % nh == 0
    hd = H // nh

    # key -> encoder dispatch (mirrors the PyTorch regex logic; unmatched keys
    # are skipped exactly like the PyTorch forward does)
    xs, wbs = [], []
    for key, x in input_dict.items():
        if re.search('angular_speed', key):
            w, b = params['angular_speed_w'], params['angular_speed_b']
        elif re.search('speed', key):
            w, b = params['speed_w'], params['speed_b']
        elif re.search('direction', key):
            w, b = params['direction_w'], params['direction_b']
        elif re.search('position', key):
            w, b = params['position_w'], params['position_b']
        else:
            continue
        in_dim = x.shape[-1]
        # zero-pad inputs / weights to a common width of 2 (mathematically a no-op)
        xs.append(jnp.pad(x.astype(jnp.float32), ((0, 0), (0, 2 - in_dim))))
        w_p = jnp.pad(w, ((0, 2 - in_dim), (0, 0)))            # (2, H)
        wbs.append(jnp.concatenate([w_p, b], axis=0))          # (3, H)

    S = len(xs)
    B = xs[0].shape[0]
    L = len(params['layers'])

    x_all = jnp.stack(xs)       # (S, B, 2)
    wb_all = jnp.stack(wbs)     # (S, 3, H)

    # block-diagonal head projector: P[d, e] = 1 iff lanes d, e are in the same head
    head_ids = jnp.arange(H, dtype=jnp.int32) // hd
    p_mat = (head_ids[:, None] == head_ids[None, :]).astype(jnp.bfloat16)   # (H, H)

    layers = params['layers']

    def stack(fn):
        return jnp.stack([fn(lp) for lp in layers])

    w_in = stack(lambda lp: lp['w_in']).astype(jnp.bfloat16)    # (L, H, 3H)
    b_in = stack(lambda lp: lp['b_in'])                         # (L, 1, 3H)
    wo = stack(lambda lp: lp['w_out']).astype(jnp.bfloat16)     # (L, H, H)
    w1 = stack(lambda lp: lp['w_ff1']).astype(jnp.bfloat16)     # (L, H, 4H)
    bb1 = stack(lambda lp: lp['b_ff1'])                         # (L, 1, 4H)
    w2 = stack(lambda lp: lp['w_ff2']).astype(jnp.bfloat16)     # (L, 4H, H)
    # pack all per-layer H-wide vectors into one array (fewer tiny DMAs)
    vecs = stack(lambda lp: jnp.concatenate(
        [lp['g1'], lp['beta1'], lp['g2'], lp['beta2'],
         lp['b_out'], lp['b_ff2']], axis=0))                    # (L, 6, H)
    fin = jnp.concatenate([params['g_final'], params['b_final']], axis=0)  # (2, H)

    HP = max(128, ((H + 127) // 128) * 128)   # lane-dense output slab width

    out = pl.pallas_call(
        functools.partial(fused_forward_kernel,
                          S=S, B=B, H=H, hd=hd, L=L, HP=HP),
        out_shape=jax.ShapeDtypeStruct((B, HP), jnp.float32),
        in_specs=[_vmem()] * 11,
        out_specs=_vmem(),
    )(x_all, wb_all, p_mat, w_in, b_in, wo, w1, bb1, w2, vecs, fin)

    return out if HP == H else out[:, :H]


if __name__ == "__main__":
    hidden_size, n_heads, n_layers = 32, 8, 1
    batch = 8

    key = jax.random.PRNGKey(0)
    k1, k2, k3, k4, kp = jax.random.split(key, 5)

    # dict insertion order == stacking order (S = 4)
    input_dict = {
        "agent_position": jax.random.normal(k1, (batch, 2), jnp.float32),
        "agent_speed": jax.random.normal(k2, (batch, 2), jnp.float32),
        "agent_direction": jax.random.normal(k3, (batch, 2), jnp.float32),
        "agent_angular_speed": jax.random.normal(k4, (batch, 1), jnp.float32),
    }

    params = init_params(kp, hidden_size, n_layers)

    out = world_transformer_encoder_forward(
        input_dict, params, hidden_size=hidden_size, n_heads=n_heads)
    out = jax.block_until_ready(out)

    assert out.shape == (batch, hidden_size), out.shape
    assert bool(jnp.all(jnp.isfinite(out)))
    print("KERNEL_OK")
</pallas_src>

<mosaic_0001>
module attributes {stable_mosaic.version = 11 : i64} {
  func.func @fused_forward_kernel(%arg0: memref<4x8x2xf32, #tpu.memory_space<vmem>>, %arg1: memref<4x3x32xf32, #tpu.memory_space<vmem>>, %arg2: memref<32x32xbf16, #tpu.memory_space<vmem>>, %arg3: memref<1x32x96xbf16, #tpu.memory_space<vmem>>, %arg4: memref<1x1x96xf32, #tpu.memory_space<vmem>>, %arg5: memref<1x32x32xbf16, #tpu.memory_space<vmem>>, %arg6: memref<1x32x128xbf16, #tpu.memory_space<vmem>>, %arg7: memref<1x1x128xf32, #tpu.memory_space<vmem>>, %arg8: memref<1x128x32xbf16, #tpu.memory_space<vmem>>, %arg9: memref<1x6x32xf32, #tpu.memory_space<vmem>>, %arg10: memref<2x32xf32, #tpu.memory_space<vmem>>, %arg11: memref<8x128xf32, #tpu.memory_space<vmem>>) attributes {dimension_semantics = [], scalar_prefetch = 0 : i64, scratch_operands = 0 : i64, tpu.core_type = #tpu.core_type<tc>} {
    %c0 = arith.constant 0 : index
    %c0_0 = arith.constant 0 : index
    %c0_1 = arith.constant 0 : index
    %0 = vector.load %arg0[%c0, %c0_0, %c0_1] : memref<4x8x2xf32, #tpu.memory_space<vmem>>, vector<4x8x2xf32>
    %c0_2 = arith.constant 0 : index
    %c0_3 = arith.constant 0 : index
    %c0_4 = arith.constant 0 : index
    %1 = vector.load %arg1[%c0_2, %c0_3, %c0_4] : memref<4x3x32xf32, #tpu.memory_space<vmem>>, vector<4x3x32xf32>
    %2 = vector.extract_strided_slice %0 {offsets = [0, 0, 0], sizes = [4, 8, 1], strides = [1, 1, 1]} : vector<4x8x2xf32> to vector<4x8x1xf32>
    %3 = vector.extract_strided_slice %1 {offsets = [0, 0, 0], sizes = [4, 1, 32], strides = [1, 1, 1]} : vector<4x3x32xf32> to vector<4x1x32xf32>
    %4 = vector.broadcast %2 : vector<4x8x1xf32> to vector<4x8x32xf32>
    %5 = vector.broadcast %3 : vector<4x1x32xf32> to vector<4x8x32xf32>
    %6 = arith.mulf %4, %5 : vector<4x8x32xf32>
    %7 = vector.extract_strided_slice %0 {offsets = [0, 0, 1], sizes = [4, 8, 1], strides = [1, 1, 1]} : vector<4x8x2xf32> to vector<4x8x1xf32>
    %8 = vector.extract_strided_slice %1 {offsets = [0, 1, 0], sizes = [4, 1, 32], strides = [1, 1, 1]} : vector<4x3x32xf32> to vector<4x1x32xf32>
    %9 = vector.broadcast %7 : vector<4x8x1xf32> to vector<4x8x32xf32>
    %10 = vector.broadcast %8 : vector<4x1x32xf32> to vector<4x8x32xf32>
    %11 = arith.mulf %9, %10 : vector<4x8x32xf32>
    %12 = arith.addf %6, %11 : vector<4x8x32xf32>
    %13 = vector.extract_strided_slice %1 {offsets = [0, 2, 0], sizes = [4, 1, 32], strides = [1, 1, 1]} : vector<4x3x32xf32> to vector<4x1x32xf32>
    %14 = vector.broadcast %13 : vector<4x1x32xf32> to vector<4x8x32xf32>
    %15 = arith.addf %12, %14 : vector<4x8x32xf32>
    %16 = vector.shape_cast %15 : vector<4x8x32xf32> to vector<32x32xf32>
    %c0_5 = arith.constant 0 : index
    %c0_6 = arith.constant 0 : index
    %17 = vector.load %arg2[%c0_5, %c0_6] : memref<32x32xbf16, #tpu.memory_space<vmem>>, vector<32x32xbf16>
    %c0_7 = arith.constant 0 : index
    %c0_8 = arith.constant 0 : index
    %c0_9 = arith.constant 0 : index
    %18 = vector.load %arg9[%c0_7, %c0_8, %c0_9] : memref<1x6x32xf32, #tpu.memory_space<vmem>>, vector<1x6x32xf32>
    %19 = vector.shape_cast %18 : vector<1x6x32xf32> to vector<6x32xf32>
    %20 = vector.extract_strided_slice %19 {offsets = [0, 0], sizes = [1, 32], strides = [1, 1]} : vector<6x32xf32> to vector<1x32xf32>
    %21 = vector.extract_strided_slice %19 {offsets = [1, 0], sizes = [1, 32], strides = [1, 1]} : vector<6x32xf32> to vector<1x32xf32>
    %22 = vector.extract_strided_slice %19 {offsets = [2, 0], sizes = [1, 32], strides = [1, 1]} : vector<6x32xf32> to vector<1x32xf32>
    %23 = vector.extract_strided_slice %19 {offsets = [3, 0], sizes = [1, 32], strides = [1, 1]} : vector<6x32xf32> to vector<1x32xf32>
    %24 = vector.extract_strided_slice %19 {offsets = [4, 0], sizes = [1, 32], strides = [1, 1]} : vector<6x32xf32> to vector<1x32xf32>
    %25 = vector.extract_strided_slice %19 {offsets = [5, 0], sizes = [1, 32], strides = [1, 1]} : vector<6x32xf32> to vector<1x32xf32>
    %cst = arith.constant dense<0.000000e+00> : vector<32xf32>
    %26 = vector.multi_reduction <add>, %16, %cst [1] : vector<32x32xf32> to vector<32xf32>
    %27 = vector.shape_cast %26 : vector<32xf32> to vector<32x1xf32>
    %cst_10 = arith.constant 3.200000e+01 : f32
    %28 = vector.broadcast %cst_10 : f32 to vector<32x1xf32>
    %29 = arith.divf %27, %28 : vector<32x1xf32>
    %30 = vector.broadcast %29 : vector<32x1xf32> to vector<32x32xf32>
    %31 = arith.subf %16, %30 : vector<32x32xf32>
    %32 = arith.mulf %31, %31 : vector<32x32xf32>
    %cst_11 = arith.constant dense<0.000000e+00> : vector<32xf32>
    %33 = vector.multi_reduction <add>, %32, %cst_11 [1] : vector<32x32xf32> to vector<32xf32>
    %34 = vector.shape_cast %33 : vector<32xf32> to vector<32x1xf32>
    %cst_12 = arith.constant 3.200000e+01 : f32
    %35 = vector.broadcast %cst_12 : f32 to vector<32x1xf32>
    %36 = arith.divf %34, %35 : vector<32x1xf32>
    %37 = vector.broadcast %29 : vector<32x1xf32> to vector<32x32xf32>
    %38 = arith.subf %16, %37 : vector<32x32xf32>
    %cst_13 = arith.constant 9.99999974E-6 : f32
    %39 = vector.broadcast %cst_13 : f32 to vector<32x1xf32>
    %40 = arith.addf %36, %39 : vector<32x1xf32>
    %41 = math.rsqrt %40 : vector<32x1xf32>
    %42 = vector.broadcast %41 : vector<32x1xf32> to vector<32x32xf32>
    %43 = arith.mulf %38, %42 : vector<32x32xf32>
    %44 = vector.broadcast %20 : vector<1x32xf32> to vector<32x32xf32>
    %45 = arith.mulf %43, %44 : vector<32x32xf32>
    %46 = vector.broadcast %21 : vector<1x32xf32> to vector<32x32xf32>
    %47 = arith.addf %45, %46 : vector<32x32xf32>
    %48 = arith.truncf %47 : vector<32x32xf32> to vector<32x32xbf16>
    %c0_14 = arith.constant 0 : index
    %c0_15 = arith.constant 0 : index
    %c0_16 = arith.constant 0 : index
    %49 = vector.load %arg3[%c0_14, %c0_15, %c0_16] : memref<1x32x96xbf16, #tpu.memory_space<vmem>>, vector<1x32x96xbf16>
    %50 = vector.shape_cast %49 : vector<1x32x96xbf16> to vector<32x96xbf16>
    %cst_17 = arith.constant dense<0.000000e+00> : vector<32x96xf32>
    %51 = tpu.matmul %48, %50, %cst_17 {dimension_numbers = #tpu.dot_dimension_numbers<[1], [0], [0], [1], [0, 0, 1, 1], [], []>} : vector<32x32xbf16>, vector<32x96xbf16>, vector<32x96xf32> -> vector<32x96xf32>
    %c0_18 = arith.constant 0 : index
    %c0_19 = arith.constant 0 : index
    %c0_20 = arith.constant 0 : index
    %52 = vector.load %arg4[%c0_18, %c0_19, %c0_20] : memref<1x1x96xf32, #tpu.memory_space<vmem>>, vector<1x1x96xf32>
    %53 = vector.shape_cast %52 : vector<1x1x96xf32> to vector<1x96xf32>
    %54 = vector.broadcast %53 : vector<1x96xf32> to vector<32x96xf32>
    %55 = arith.addf %51, %54 : vector<32x96xf32>
    %56 = vector.extract_strided_slice %55 {offsets = [0, 0], sizes = [32, 32], strides = [1, 1]} : vector<32x96xf32> to vector<32x32xf32>
    %57 = vector.shape_cast %56 : vector<32x32xf32> to vector<4x8x32xf32>
    %cst_21 = arith.constant 5.000000e-01 : f32
    %58 = vector.broadcast %cst_21 : f32 to vector<4x8x32xf32>
    %59 = arith.mulf %57, %58 : vector<4x8x32xf32>
    %60 = vector.extract_strided_slice %55 {offsets = [0, 32], sizes = [32, 32], strides = [1, 1]} : vector<32x96xf32> to vector<32x32xf32>
    %61 = vector.shape_cast %60 : vector<32x32xf32> to vector<4x8x32xf32>
    %62 = vector.extract_strided_slice %55 {offsets = [0, 64], sizes = [32, 32], strides = [1, 1]} : vector<32x96xf32> to vector<32x32xf32>
    %63 = vector.shape_cast %62 : vector<32x32xf32> to vector<4x8x32xf32>
    %64 = vector.shape_cast %59 : vector<4x8x32xf32> to vector<1x4x8x32xf32>
    %65 = vector.shape_cast %61 : vector<4x8x32xf32> to vector<4x1x8x32xf32>
    %66 = vector.broadcast %64 : vector<1x4x8x32xf32> to vector<4x4x8x32xf32>
    %67 = vector.broadcast %65 : vector<4x1x8x32xf32> to vector<4x4x8x32xf32>
    %68 = arith.mulf %66, %67 : vector<4x4x8x32xf32>
    %69 = vector.shape_cast %68 : vector<4x4x8x32xf32> to vector<128x32xf32>
    %70 = arith.truncf %69 : vector<128x32xf32> to vector<128x32xbf16>
    %cst_22 = arith.constant dense<0.000000e+00> : vector<128x32xf32>
    %71 = tpu.matmul %70, %17, %cst_22 {dimension_numbers = #tpu.dot_dimension_numbers<[1], [0], [0], [1], [0, 0, 1, 1], [], []>} : vector<128x32xbf16>, vector<32x32xbf16>, vector<128x32xf32> -> vector<128x32xf32>
    %72 = vector.shape_cast %71 : vector<128x32xf32> to vector<4x4x8x32xf32>
    %73 = vector.extract_strided_slice %72 {offsets = [0, 0, 0, 0], sizes = [1, 4, 8, 32], strides = [1, 1, 1, 1]} : vector<4x4x8x32xf32> to vector<1x4x8x32xf32>
    %74 = vector.shape_cast %73 : vector<1x4x8x32xf32> to vector<4x8x32xf32>
    %75 = vector.extract_strided_slice %72 {offsets = [1, 0, 0, 0], sizes = [1, 4, 8, 32], strides = [1, 1, 1, 1]} : vector<4x4x8x32xf32> to vector<1x4x8x32xf32>
    %76 = vector.shape_cast %75 : vector<1x4x8x32xf32> to vector<4x8x32xf32>
    %77 = arith.maximumf %74, %76 : vector<4x8x32xf32>
    %78 = vector.extract_strided_slice %72 {offsets = [2, 0, 0, 0], sizes = [1, 4, 8, 32], strides = [1, 1, 1, 1]} : vector<4x4x8x32xf32> to vector<1x4x8x32xf32>
    %79 = vector.shape_cast %78 : vector<1x4x8x32xf32> to vector<4x8x32xf32>
    %80 = arith.maximumf %77, %79 : vector<4x8x32xf32>
    %81 = vector.extract_strided_slice %72 {offsets = [3, 0, 0, 0], sizes = [1, 4, 8, 32], strides = [1, 1, 1, 1]} : vector<4x4x8x32xf32> to vector<1x4x8x32xf32>
    %82 = vector.shape_cast %81 : vector<1x4x8x32xf32> to vector<4x8x32xf32>
    %83 = arith.maximumf %80, %82 : vector<4x8x32xf32>
    %84 = vector.extract_strided_slice %72 {offsets = [0, 0, 0, 0], sizes = [1, 4, 8, 32], strides = [1, 1, 1, 1]} : vector<4x4x8x32xf32> to vector<1x4x8x32xf32>
    %85 = vector.shape_cast %84 : vector<1x4x8x32xf32> to vector<4x8x32xf32>
    %86 = arith.subf %85, %83 : vector<4x8x32xf32>
    %87 = math.exp %86 : vector<4x8x32xf32>
    %88 = vector.extract_strided_slice %72 {offsets = [1, 0, 0, 0], sizes = [1, 4, 8, 32], strides = [1, 1, 1, 1]} : vector<4x4x8x32xf32> to vector<1x4x8x32xf32>
    %89 = vector.shape_cast %88 : vector<1x4x8x32xf32> to vector<4x8x32xf32>
    %90 = arith.subf %89, %83 : vector<4x8x32xf32>
    %91 = math.exp %90 : vector<4x8x32xf32>
    %92 = vector.extract_strided_slice %72 {offsets = [2, 0, 0, 0], sizes = [1, 4, 8, 32], strides = [1, 1, 1, 1]} : vector<4x4x8x32xf32> to vector<1x4x8x32xf32>
    %93 = vector.shape_cast %92 : vector<1x4x8x32xf32> to vector<4x8x32xf32>
    %94 = arith.subf %93, %83 : vector<4x8x32xf32>
    %95 = math.exp %94 : vector<4x8x32xf32>
    %96 = vector.extract_strided_slice %72 {offsets = [3, 0, 0, 0], sizes = [1, 4, 8, 32], strides = [1, 1, 1, 1]} : vector<4x4x8x32xf32> to vector<1x4x8x32xf32>
    %97 = vector.shape_cast %96 : vector<1x4x8x32xf32> to vector<4x8x32xf32>
    %98 = arith.subf %97, %83 : vector<4x8x32xf32>
    %99 = math.exp %98 : vector<4x8x32xf32>
    %100 = arith.addf %87, %91 : vector<4x8x32xf32>
    %101 = arith.addf %100, %95 : vector<4x8x32xf32>
    %102 = arith.addf %101, %99 : vector<4x8x32xf32>
    %103 = tpu.reciprocal %102 {approx = true} : vector<4x8x32xf32> -> vector<4x8x32xf32>
    %104 = arith.mulf %102, %103 : vector<4x8x32xf32>
    %cst_23 = arith.constant 2.000000e+00 : f32
    %105 = vector.broadcast %cst_23 : f32 to vector<4x8x32xf32>
    %106 = arith.subf %105, %104 : vector<4x8x32xf32>
    %107 = arith.mulf %103, %106 : vector<4x8x32xf32>
    %108 = vector.extract_strided_slice %63 {offsets = [0, 0, 0], sizes = [1, 8, 32], strides = [1, 1, 1]} : vector<4x8x32xf32> to vector<1x8x32xf32>
    %109 = vector.shape_cast %108 : vector<1x8x32xf32> to vector<8x32xf32>
    %110 = vector.shape_cast %109 : vector<8x32xf32> to vector<1x8x32xf32>
    %111 = vector.broadcast %110 : vector<1x8x32xf32> to vector<4x8x32xf32>
    %112 = arith.mulf %87, %111 : vector<4x8x32xf32>
    %113 = vector.extract_strided_slice %63 {offsets = [1, 0, 0], sizes = [1, 8, 32], strides = [1, 1, 1]} : vector<4x8x32xf32> to vector<1x8x32xf32>
    %114 = vector.shape_cast %113 : vector<1x8x32xf32> to vector<8x32xf32>
    %115 = vector.shape_cast %114 : vector<8x32xf32> to vector<1x8x32xf32>
    %116 = vector.broadcast %115 : vector<1x8x32xf32> to vector<4x8x32xf32>
    %117 = arith.mulf %91, %116 : vector<4x8x32xf32>
    %118 = arith.addf %112, %117 : vector<4x8x32xf32>
    %119 = vector.extract_strided_slice %63 {offsets = [2, 0, 0], sizes = [1, 8, 32], strides = [1, 1, 1]} : vector<4x8x32xf32> to vector<1x8x32xf32>
    %120 = vector.shape_cast %119 : vector<1x8x32xf32> to vector<8x32xf32>
    %121 = vector.shape_cast %120 : vector<8x32xf32> to vector<1x8x32xf32>
    %122 = vector.broadcast %121 : vector<1x8x32xf32> to vector<4x8x32xf32>
    %123 = arith.mulf %95, %122 : vector<4x8x32xf32>
    %124 = arith.addf %118, %123 : vector<4x8x32xf32>
    %125 = vector.extract_strided_slice %63 {offsets = [3, 0, 0], sizes = [1, 8, 32], strides = [1, 1, 1]} : vector<4x8x32xf32> to vector<1x8x32xf32>
    %126 = vector.shape_cast %125 : vector<1x8x32xf32> to vector<8x32xf32>
    %127 = vector.shape_cast %126 : vector<8x32xf32> to vector<1x8x32xf32>
    %128 = vector.broadcast %127 : vector<1x8x32xf32> to vector<4x8x32xf32>
    %129 = arith.mulf %99, %128 : vector<4x8x32xf32>
    %130 = arith.addf %124, %129 : vector<4x8x32xf32>
    %131 = arith.mulf %130, %107 : vector<4x8x32xf32>
    %132 = vector.shape_cast %131 : vector<4x8x32xf32> to vector<32x32xf32>
    %133 = arith.truncf %132 : vector<32x32xf32> to vector<32x32xbf16>
    %c0_24 = arith.constant 0 : index
    %c0_25 = arith.constant 0 : index
    %c0_26 = arith.constant 0 : index
    %134 = vector.load %arg5[%c0_24, %c0_25, %c0_26] : memref<1x32x32xbf16, #tpu.memory_space<vmem>>, vector<1x32x32xbf16>
    %135 = vector.shape_cast %134 : vector<1x32x32xbf16> to vector<32x32xbf16>
    %cst_27 = arith.constant dense<0.000000e+00> : vector<32x32xf32>
    %136 = tpu.matmul %133, %135, %cst_27 {dimension_numbers = #tpu.dot_dimension_numbers<[1], [0], [0], [1], [0, 0, 1, 1], [], []>} : vector<32x32xbf16>, vector<32x32xbf16>, vector<32x32xf32> -> vector<32x32xf32>
    %137 = arith.addf %16, %136 : vector<32x32xf32>
    %138 = vector.broadcast %24 : vector<1x32xf32> to vector<32x32xf32>
    %139 = arith.addf %137, %138 : vector<32x32xf32>
    %cst_28 = arith.constant dense<0.000000e+00> : vector<32xf32>
    %140 = vector.multi_reduction <add>, %139, %cst_28 [1] : vector<32x32xf32> to vector<32xf32>
    %141 = vector.shape_cast %140 : vector<32xf32> to vector<32x1xf32>
    %cst_29 = arith.constant 3.200000e+01 : f32
    %142 = vector.broadcast %cst_29 : f32 to vector<32x1xf32>
    %143 = arith.divf %141, %142 : vector<32x1xf32>
    %144 = vector.broadcast %143 : vector<32x1xf32> to vector<32x32xf32>
    %145 = arith.subf %139, %144 : vector<32x32xf32>
    %146 = arith.mulf %145, %145 : vector<32x32xf32>
    %cst_30 = arith.constant dense<0.000000e+00> : vector<32xf32>
    %147 = vector.multi_reduction <add>, %146, %cst_30 [1] : vector<32x32xf32> to vector<32xf32>
    %148 = vector.shape_cast %147 : vector<32xf32> to vector<32x1xf32>
    %cst_31 = arith.constant 3.200000e+01 : f32
    %149 = vector.broadcast %cst_31 : f32 to vector<32x1xf32>
    %150 = arith.divf %148, %149 : vector<32x1xf32>
    %151 = vector.broadcast %143 : vector<32x1xf32> to vector<32x32xf32>
    %152 = arith.subf %139, %151 : vector<32x32xf32>
    %cst_32 = arith.constant 9.99999974E-6 : f32
    %153 = vector.broadcast %cst_32 : f32 to vector<32x1xf32>
    %154 = arith.addf %150, %153 : vector<32x1xf32>
    %155 = math.rsqrt %154 : vector<32x1xf32>
    %156 = vector.broadcast %155 : vector<32x1xf32> to vector<32x32xf32>
    %157 = arith.mulf %152, %156 : vector<32x32xf32>
    %158 = vector.broadcast %22 : vector<1x32xf32> to vector<32x32xf32>
    %159 = arith.mulf %157, %158 : vector<32x32xf32>
    %160 = vector.broadcast %23 : vector<1x32xf32> to vector<32x32xf32>
    %161 = arith.addf %159, %160 : vector<32x32xf32>
    %162 = arith.truncf %161 : vector<32x32xf32> to vector<32x32xbf16>
    %c0_33 = arith.constant 0 : index
    %c0_34 = arith.constant 0 : index
    %c0_35 = arith.constant 0 : index
    %163 = vector.load %arg6[%c0_33, %c0_34, %c0_35] : memref<1x32x128xbf16, #tpu.memory_space<vmem>>, vector<1x32x128xbf16>
    %164 = vector.shape_cast %163 : vector<1x32x128xbf16> to vector<32x128xbf16>
    %cst_36 = arith.constant dense<0.000000e+00> : vector<32x128xf32>
    %165 = tpu.matmul %162, %164, %cst_36 {dimension_numbers = #tpu.dot_dimension_numbers<[1], [0], [0], [1], [0, 0, 1, 1], [], []>} : vector<32x32xbf16>, vector<32x128xbf16>, vector<32x128xf32> -> vector<32x128xf32>
    %c0_37 = arith.constant 0 : index
    %c0_38 = arith.constant 0 : index
    %c0_39 = arith.constant 0 : index
    %166 = vector.load %arg7[%c0_37, %c0_38, %c0_39] : memref<1x1x128xf32, #tpu.memory_space<vmem>>, vector<1x1x128xf32>
    %167 = vector.shape_cast %166 : vector<1x1x128xf32> to vector<1x128xf32>
    %168 = vector.broadcast %167 : vector<1x128xf32> to vector<32x128xf32>
    %169 = arith.addf %165, %168 : vector<32x128xf32>
    %cst_40 = arith.constant 5.000000e-01 : f32
    %170 = vector.broadcast %cst_40 : f32 to vector<32x128xf32>
    %171 = arith.mulf %170, %169 : vector<32x128xf32>
    %cst_41 = arith.constant 4.471500e-02 : f32
    %172 = vector.broadcast %cst_41 : f32 to vector<32x128xf32>
    %173 = arith.mulf %172, %169 : vector<32x128xf32>
    %174 = arith.mulf %173, %169 : vector<32x128xf32>
    %175 = arith.mulf %174, %169 : vector<32x128xf32>
    %176 = arith.addf %169, %175 : vector<32x128xf32>
    %cst_42 = arith.constant 0.797884583 : f32
    %177 = vector.broadcast %cst_42 : f32 to vector<32x128xf32>
    %178 = arith.mulf %177, %176 : vector<32x128xf32>
    %179 = math.tanh %178 : vector<32x128xf32>
    %cst_43 = arith.constant 1.000000e+00 : f32
    %180 = vector.broadcast %cst_43 : f32 to vector<32x128xf32>
    %181 = arith.addf %180, %179 : vector<32x128xf32>
    %182 = arith.mulf %171, %181 : vector<32x128xf32>
    %183 = arith.truncf %182 : vector<32x128xf32> to vector<32x128xbf16>
    %c0_44 = arith.constant 0 : index
    %c0_45 = arith.constant 0 : index
    %c0_46 = arith.constant 0 : index
    %184 = vector.load %arg8[%c0_44, %c0_45, %c0_46] : memref<1x128x32xbf16, #tpu.memory_space<vmem>>, vector<1x128x32xbf16>
    %185 = vector.shape_cast %184 : vector<1x128x32xbf16> to vector<128x32xbf16>
    %cst_47 = arith.constant dense<0.000000e+00> : vector<32x32xf32>
    %186 = tpu.matmul %183, %185, %cst_47 {dimension_numbers = #tpu.dot_dimension_numbers<[1], [0], [0], [1], [0, 0, 1, 1], [], []>} : vector<32x128xbf16>, vector<128x32xbf16>, vector<32x32xf32> -> vector<32x32xf32>
    %187 = arith.addf %139, %186 : vector<32x32xf32>
    %188 = vector.broadcast %25 : vector<1x32xf32> to vector<32x32xf32>
    %189 = arith.addf %187, %188 : vector<32x32xf32>
    %c0_48 = arith.constant 0 : index
    %c0_49 = arith.constant 0 : index
    %190 = vector.load %arg10[%c0_48, %c0_49] : memref<2x32xf32, #tpu.memory_space<vmem>>, vector<2x32xf32>
    %191 = vector.extract_strided_slice %190 {offsets = [0, 0], sizes = [1, 32], strides = [1, 1]} : vector<2x32xf32> to vector<1x32xf32>
    %192 = vector.extract_strided_slice %190 {offsets = [1, 0], sizes = [1, 32], strides = [1, 1]} : vector<2x32xf32> to vector<1x32xf32>
    %cst_50 = arith.constant dense<0.000000e+00> : vector<32xf32>
    %193 = vector.multi_reduction <add>, %189, %cst_50 [1] : vector<32x32xf32> to vector<32xf32>
    %194 = vector.shape_cast %193 : vector<32xf32> to vector<32x1xf32>
    %cst_51 = arith.constant 3.200000e+01 : f32
    %195 = vector.broadcast %cst_51 : f32 to vector<32x1xf32>
    %196 = arith.divf %194, %195 : vector<32x1xf32>
    %197 = vector.broadcast %196 : vector<32x1xf32> to vector<32x32xf32>
    %198 = arith.subf %189, %197 : vector<32x32xf32>
    %199 = arith.mulf %198, %198 : vector<32x32xf32>
    %cst_52 = arith.constant dense<0.000000e+00> : vector<32xf32>
    %200 = vector.multi_reduction <add>, %199, %cst_52 [1] : vector<32x32xf32> to vector<32xf32>
    %201 = vector.shape_cast %200 : vector<32xf32> to vector<32x1xf32>
    %cst_53 = arith.constant 3.200000e+01 : f32
    %202 = vector.broadcast %cst_53 : f32 to vector<32x1xf32>
    %203 = arith.divf %201, %202 : vector<32x1xf32>
    %204 = vector.broadcast %196 : vector<32x1xf32> to vector<32x32xf32>
    %205 = arith.subf %189, %204 : vector<32x32xf32>
    %cst_54 = arith.constant 9.99999974E-6 : f32
    %206 = vector.broadcast %cst_54 : f32 to vector<32x1xf32>
    %207 = arith.addf %203, %206 : vector<32x1xf32>
    %208 = math.rsqrt %207 : vector<32x1xf32>
    %209 = vector.broadcast %208 : vector<32x1xf32> to vector<32x32xf32>
    %210 = arith.mulf %205, %209 : vector<32x32xf32>
    %211 = vector.broadcast %191 : vector<1x32xf32> to vector<32x32xf32>
    %212 = arith.mulf %210, %211 : vector<32x32xf32>
    %213 = vector.broadcast %192 : vector<1x32xf32> to vector<32x32xf32>
    %214 = arith.addf %212, %213 : vector<32x32xf32>
    %215 = vector.shape_cast %214 : vector<32x32xf32> to vector<4x8x32xf32>
    %216 = vector.extract_strided_slice %215 {offsets = [0, 0, 0], sizes = [1, 8, 32], strides = [1, 1, 1]} : vector<4x8x32xf32> to vector<1x8x32xf32>
    %217 = vector.shape_cast %216 : vector<1x8x32xf32> to vector<8x32xf32>
    %218 = vector.extract_strided_slice %215 {offsets = [1, 0, 0], sizes = [1, 8, 32], strides = [1, 1, 1]} : vector<4x8x32xf32> to vector<1x8x32xf32>
    %219 = vector.shape_cast %218 : vector<1x8x32xf32> to vector<8x32xf32>
    %220 = arith.addf %217, %219 : vector<8x32xf32>
    %221 = vector.extract_strided_slice %215 {offsets = [2, 0, 0], sizes = [1, 8, 32], strides = [1, 1, 1]} : vector<4x8x32xf32> to vector<1x8x32xf32>
    %222 = vector.shape_cast %221 : vector<1x8x32xf32> to vector<8x32xf32>
    %223 = arith.addf %220, %222 : vector<8x32xf32>
    %224 = vector.extract_strided_slice %215 {offsets = [3, 0, 0], sizes = [1, 8, 32], strides = [1, 1, 1]} : vector<4x8x32xf32> to vector<1x8x32xf32>
    %225 = vector.shape_cast %224 : vector<1x8x32xf32> to vector<8x32xf32>
    %226 = arith.addf %223, %225 : vector<8x32xf32>
    %cst_55 = arith.constant 2.500000e-01 : f32
    %227 = vector.broadcast %cst_55 : f32 to vector<8x32xf32>
    %228 = arith.mulf %226, %227 : vector<8x32xf32>
    %229 = tpu.iota {dimensions = array<i32: 0>} : vector<32x128xi32>
    %230 = tpu.iota {dimensions = array<i32: 1>} : vector<32x128xi32>
    %231 = arith.cmpi eq, %229, %230 : vector<32x128xi32>
    %232 = arith.extui %231 : vector<32x128xi1> to vector<32x128xi32>
    %233 = arith.sitofp %232 : vector<32x128xi32> to vector<32x128xf32>
    %cst_56 = arith.constant dense<0.000000e+00> : vector<8x128xf32>
    %234 = tpu.matmul %228, %233, %cst_56 {dimension_numbers = #tpu.dot_dimension_numbers<[1], [0], [0], [1], [0, 0, 1, 1], [], []>} : vector<8x32xf32>, vector<32x128xf32>, vector<8x128xf32> -> vector<8x128xf32>
    %c0_57 = arith.constant 0 : index
    %c0_58 = arith.constant 0 : index
    %235 = vector.load %arg11[%c0_57, %c0_58] : memref<8x128xf32, #tpu.memory_space<vmem>>, vector<8x128xf32>
    tpu.vector_store %arg11[%c0_57, %c0_58], %234 {strides = array<i32>} : memref<8x128xf32, #tpu.memory_space<vmem>>, vector<8x128xf32>,
    return
  }
}

</mosaic_0001>

<bundles_post_ra>
// kernel: tpu_custom_call.1
= control target key start
LH: loop header
LB: loop body
LE: loop exit
PB: predicated region body
PF: predicated region fallthrough
CT: control target
= control target key end

     0   :  { %v1464_v1 = vmov 1   ;;  %v1465_v2 = vmov 0   ;;  %s1747_s0 = inlined_call_operand.vmem [shape: f32[4,8,2], index: 0, kind: input, shape index: {}]   ;;  %s1748_s1 = inlined_call_operand.vmem [shape: f32[4,3,32], index: 1, kind: input, shape index: {}]   ;;  %s1749_s2 = inlined_call_operand.vmem [shape: bf16[32,32], index: 2, kind: input, shape index: {}]   ;;  %s1750_s3 = inlined_call_operand.vmem [shape: bf16[1,32,96], index: 3, kind: input, shape index: {}]   ;;  %s1751_s4 = inlined_call_operand.vmem [shape: f32[1,1,96], index: 4, kind: input, shape index: {}]   ;;  %s1752_s5 = inlined_call_operand.vmem [shape: bf16[1,32,32], index: 5, kind: input, shape index: {}]   ;;  %s1753_s6 = inlined_call_operand.vmem [shape: bf16[1,32,128], index: 6, kind: input, shape index: {}]   ;;  %s1754_s7 = inlined_call_operand.vmem [shape: f32[1,1,128], index: 7, kind: input, shape index: {}]   ;;  %s1755_s8 = inlined_call_operand.vmem [shape: bf16[1,128,32], index: 8, kind: input, shape index: {}]   ;;  %s1756_s9 = inlined_call_operand.vmem [shape: f32[1,6,32], index: 9, kind: input, shape index: {}]   ;;  %s1757_s10 = inlined_call_operand.vmem [shape: f32[2,32], index: 10, kind: input, shape index: {}]   ;;  %s1758_s11 = inlined_call_operand.hbm [shape: f32[8,128], index: 11, kind: output, shape index: {}]  }
   0x1   :  { %v40_v0 = vld [vmem:[%s1747_s0] sm:$0xff]  ;;  %1350 = vset.pattern.permute.xlu1 %v1464_v1  ;;  %1349 = vset.pattern.permute.xlu0 %v1465_v2  ;;  %v41_v3 = vld [vmem:[%s1747_s0 + $0x8] sm:$0xff]  ;;  %v42_v4 = vld [vmem:[%s1747_s0 + $0x10] sm:$0xff] }
   0x2   :  { %89 = vperm.xlu1 %1350, %v40_v0   ;;  %50 = vperm.xlu0 %1349, %v40_v0   ;;  %v43_v5 = vld [vmem:[%s1747_s0 + $0x18] sm:$0xff] }
   0x6   :  { %93 = vperm.xlu1 %1350, %v41_v3   ;;  %55 = vperm.xlu0 %1349, %v41_v3  }
   0xa   :  { %1351 = vset.pattern.permute.xlu1 %v1465_v2  ;;  %60 = vperm.xlu0 %1349, %v42_v4  }
   0xb   :  { %65 = vperm.xlu1 %1351, %v43_v5  }
   0xe   :  { %1352 = vset.pattern.permute.xlu0 %v1464_v1 }
   0xf   :  { %16 = vsyncpa [#allocation3], 0  ;;  %1353 = vset.pattern.permute.xlu1 %v1464_v1  ;;  %97 = vperm.xlu0 %1352, %v42_v4   ;;  %v68_v6 = vlaneseq  ;;  %v44_v10 = vld [vmem:[%s1748_s1] sm:$0x7]  ;;  %v45_v14 = vld [vmem:[%s1748_s1 + $0x4] sm:$0x7] }
  0x10   :  { %101 = vperm.xlu1 %1353, %v43_v5   ;;  %vm153_vm0 = vcmask 261120   ;;  %v46_v31 = vld [vmem:[%s1748_s1 + $0x8] sm:$0x7]  ;;  %v47_v33 = vld [vmem:[%s1748_s1 + $0xc] sm:$0x7]  ;;  %s1466_s22 = smov 96  }
  0x11   :  { %v1545_v7 = vshrl.u32 %v68_v6, 7  ;;  %vm1469_vm2 = vmmov 0  }
  0x13   :  { %v1548_v8 = vsub.s32 1, %v1545_v7  ;;  %v1551_v9 = vsub.s32 0, %v1545_v7  ;;  %v1557_v11 = vsub.s32 2, %v1545_v7 }
  0x15   :  { %v107_v12 = vrot.slane %v44_v10, %v1548_v8  ;;  %v71_v13 = vrot.slane %v44_v10, %v1551_v9  ;;  %v131_v16 = vrot.slane %v44_v10, %v1557_v11  ;;  %v111_v20 = vrot.slane %v45_v14, %v1548_v8 }
  0x16   :  { %v75_v21 = vrot.slane %v45_v14, %v1551_v9  ;;  %v135_v27 = vrot.slane %v45_v14, %v1557_v11  ;;  %v79_v36 = vrot.slane %v46_v31, %v1551_v9  ;;  %v115_v37 = vrot.slane %v46_v31, %v1548_v8 }
  0x17   :  { %v83_v38 = vrot.slane %v47_v33, %v1551_v9  ;;  %v119_v40 = vrot.slane %v47_v33, %v1548_v8  ;;  %v139_v43 = vrot.slane %v46_v31, %v1557_v11  ;;  %v143_v47 = vrot.slane %v47_v33, %v1557_v11 }
  0x7d   :  { %v90_v15 = vpop.permute.xlu1 %89  ;;  %v51_v17 = vpop.permute.xlu0 %50 }
  0x7e   :  { %v120_v18 = vmul.f32 %v107_v12, %v90_v15  ;;  %v84_v19 = vmul.f32 %v71_v13, %v51_v17  ;;  %v1355_v17 = vld [vmem:[%s1750_s3] sm:$0xff]  }
  0x80   :  { %v124_v22 = vadd.f32 %v120_v18, %v84_v19 }
  0x81   :  { %v94_v23 = vpop.permute.xlu1 %93  ;;  %v56_v24 = vpop.permute.xlu0 %55 }
  0x82   :  { %v1567_v25 = vadd.f32 %v131_v16, %v124_v22  ;;  %v121_v26 = vmul.f32 %v111_v20, %v94_v23  ;;  %v85_v28 = vmul.f32 %v75_v21, %v56_v24  ;;  %v1354_v16 = vld [vmem:[%s1750_s3 + $0x8] sm:$0xff]  }
  0x83   :  { %1266 = vmatprep.subr.bf16.mxu0 %v1354_v16 }
  0x84   :  { %v125_v29 = vadd.f32 %v121_v26, %v85_v28  ;;  %v154_v30 = vsel %vm153_vm0, %v1567_v25, 0.0  ;;  %1267 = vmatpush3.bf16.msra.mxu0 %v1354_v16 }
  0x85   :  { %155 = vadd.xlane.f32.xlu1 %v154_v30  ;;  %v61_v32 = vpop.permute.xlu0 %60  ;;  %1268 = vmatprep.subr.bf16.mxu0 %v1355_v17  ;;  %v1613_v30 = vld [vmem:[%s1756_s9] sm:$0x3f] }
  0x86   :  { %v1578_v34 = vadd.f32 %v135_v27, %v125_v29  ;;  %v66_v35 = vpop.permute.xlu1 %65  ;;  %v86_v42 = vmul.f32 %v79_v36, %v61_v32 }
  0x87   :  { %v87_v46 = vmul.f32 %v83_v38, %v66_v35  ;;  %v210_v35 = vrot.slane %v1613_v30, %v1551_v9 }
  0x88   :  { %v157_v39 = vsel %vm153_vm0, %v1578_v34, 0.0  ;;  %1269 = vmatpush3.bf16.msra.mxu0 %v1355_v17 }
  0x89   :  { %158 = vadd.xlane.f32.xlu0 %v157_v39  ;;  %v218_v39 = vrot.slane %v1613_v30, %v1548_v8 }
  0x8a   :  { %v98_v41 = vpop.permute.xlu0 %97 }
  0x8b   :  { %v122_v44 = vmul.f32 %v115_v37, %v98_v41  ;;  %v102_v45 = vpop.permute.xlu1 %101 }
  0x8c   :  { %v123_v48 = vmul.f32 %v119_v40, %v102_v45 }
  0x8d   :  { %v126_v49 = vadd.f32 %v122_v44, %v86_v42 }
  0x8e   :  { %v127_v50 = vadd.f32 %v123_v48, %v87_v46 }
  0x8f   :  { %v1588_v51 = vadd.f32 %v139_v43, %v126_v49 }
  0x90   :  { %v1590_v52 = vadd.f32 %v143_v47, %v127_v50 }
  0x91   :  { %v160_v53 = vsel %vm153_vm0, %v1588_v51, 0.0 }
  0x92   :  { %161 = vadd.xlane.f32.xlu0 %v160_v53  ;;  %v163_v54 = vsel %vm153_vm0, %v1590_v52, 0.0 }
  0x93   :  { %164 = vadd.xlane.f32.xlu1 %v163_v54 }
 0x10e   :  { %v156_v55 = vpop.xlane.xlu1 %155 }
 0x10f   :  { %v167_v56 = vmul.f32 0.03125, %v156_v55  ;;  %v1356_v55 = vld [vmem:[%s1749_s2 + $0x8] sm:$0xff]  }
 0x110   :  { %1274 = vmatprep.subr.bf16.mxu1 %v1356_v55 }
 0x111   :  { %v171_v57 = vsub.f32 %v1567_v25, %v167_v56  ;;  %1275 = vmatpush3.bf16.msra.mxu1 %v1356_v55  ;;  %v1357_v56 = vld [vmem:[%s1749_s2] sm:$0xff]   ;;  %s1467_s2 = smov 64  }
 0x112   :  { %v159_v58 = vpop.xlane.xlu0 %158  ;;  %1276 = vmatprep.subr.bf16.mxu1 %v1357_v56 }
 0x113   :  { %v168_v59 = vmul.f32 0.03125, %v159_v58  ;;  %v175_v60 = vmul.f32 %v171_v57, %v171_v57  ;;  %v1188_v58 = vld [vmem:[%s1751_s4] ss:$0 sm:$0xff] }
 0x115   :  { %v172_v61 = vsub.f32 %v1578_v34, %v168_v59  ;;  %v179_v62 = vsel %vm153_vm0, %v175_v60, 0.0  ;;  %1277 = vmatpush3.bf16.msra.mxu1 %v1357_v56 }
 0x116   :  { %180 = vadd.xlane.f32.xlu0 %v179_v62 }
 0x117   :  { %v176_v63 = vmul.f32 %v172_v61, %v172_v61 }
 0x119   :  { %v182_v0 = vsel %vm153_vm0, %v176_v63, 0.0 }
 0x11a   :  { %183 = vadd.xlane.f32.xlu1 %v182_v0 }
 0x11b   :  { %v162_v1 = vpop.xlane.xlu0 %161 }
 0x11c   :  { %v169_v2 = vmul.f32 0.03125, %v162_v1  ;;  %v165_v3 = vpop.xlane.xlu1 %164 }
 0x11d   :  { %v170_v4 = vmul.f32 0.03125, %v165_v3 }
 0x11e   :  { %v173_v5 = vsub.f32 %v1588_v51, %v169_v2 }
 0x11f   :  { %v174_v10 = vsub.f32 %v1590_v52, %v170_v4 }
 0x120   :  { %v177_v12 = vmul.f32 %v173_v5, %v173_v5 }
 0x121   :  { %v178_v13 = vmul.f32 %v174_v10, %v174_v10 }
 0x122   :  { %v185_v14 = vsel %vm153_vm0, %v177_v12, 0.0 }
 0x123   :  { %186 = vadd.xlane.f32.xlu0 %v185_v14  ;;  %v188_v15 = vsel %vm153_vm0, %v178_v13, 0.0 }
 0x124   :  { %189 = vadd.xlane.f32.xlu1 %v188_v15 }
 0x19f   :  { %v181_v18 = vpop.xlane.xlu0 %180 }
 0x1a0   :  { %v191_v19 = vmul.f32 0.03125, %v181_v18 }
 0x1a2   :  { %v195_v20 = vadd.f32 1e-05, %v191_v19 }
 0x1a3   :  { %v184_v21 = vpop.xlane.xlu1 %183 }
 0x1a4   :  { %1370 = vrsqrt.f32 %v195_v20  ;;  %v192_v22 = vmul.f32 0.03125, %v184_v21 }
 0x1a6   :  { %v196_v23 = vadd.f32 1e-05, %v192_v22 }
 0x1a8   :  { %1372 = vrsqrt.f32 %v196_v23 }
 0x1ac   :  { %v187_v24 = vpop.xlane.xlu0 %186 }
 0x1ad   :  { %v193_v26 = vmul.f32 0.03125, %v187_v24  ;;  %v190_v27 = vpop.xlane.xlu1 %189 }
 0x1ae   :  { %v194_v28 = vmul.f32 0.03125, %v190_v27 }
 0x1af   :  { %v197_v29 = vadd.f32 1e-05, %v193_v26 }
 0x1b0   :  { %v198_v31 = vadd.f32 1e-05, %v194_v28 }
 0x1b1   :  { %v1371_v32 = vpop.eup %1370  ;;  %1374 = vrsqrt.f32 %v197_v29 }
 0x1b2   :  { %1376 = vrsqrt.f32 %v198_v31  ;;  %v203_v33 = vmul.f32 %v1371_v32, %v171_v57 }
 0x1b4   :  { %v211_v38 = vmul.f32 %v210_v35, %v203_v33 }
 0x1b5   :  { %v1373_v36 = vpop.eup %1372 }
 0x1b6   :  { %v204_v37 = vmul.f32 %v1373_v36, %v172_v61  ;;  %v219_v41 = vadd.f32 %v218_v39, %v211_v38 }
 0x1b8   :  { %v212_v40 = vmul.f32 %v210_v35, %v204_v37 }
 0x1ba   :  { %v220_v42 = vadd.f32 %v218_v39, %v212_v40 }
 0x1bc   :  { %v223_v43 = vpack.c.bf16 %v220_v42, %v219_v41  ;;  %v1358_v42 = vld [vmem:[%s1752_s5 + $0x8] sm:$0xff]  }
 0x1bd   :  { %1294 = vmatprep.subr.bf16.mxu0 %v1358_v42 }
 0x1be   :  { %v1375_v44 = vpop.eup %1374  ;;  %1270 = vmatprep.mubr.msk.bf16.mxu0 %vm153_vm0, %v223_v43  ;;  %v1359_v43 = vld [vmem:[%s1752_s5] sm:$0xff]  }
 0x1bf   :  { %v1377_v45 = vpop.eup %1376  ;;  %v205_v46 = vmul.f32 %v1375_v44, %v173_v5 }
 0x1c0   :  { %v206_v47 = vmul.f32 %v1377_v45, %v174_v10 }
 0x1c1   :  { %v213_v48 = vmul.f32 %v210_v35, %v205_v46 }
 0x1c2   :  { %v214_v49 = vmul.f32 %v210_v35, %v206_v47 }
 0x1c3   :  { %v221_v50 = vadd.f32 %v218_v39, %v213_v48 }
 0x1c4   :  { %v222_v53 = vadd.f32 %v218_v39, %v214_v49 }
 0x1c6   :  { %v224_v54 = vpack.c.bf16 %v222_v53, %v221_v50 }
 0x1c8   :  { %1271 = vmatmul.mubr.msk.bf16.vlgmr.msra.gmra.mxu0 %vm153_vm0, %v224_v54 }
 0x1c9   :  { %1295 = vmatpush3.bf16.msra.mxu0 %v1358_v42 }
 0x1ca   :  { %1296 = vmatprep.subr.bf16.mxu0 %v1359_v43 }
 0x1cd   :  { %1297 = vmatpush3.bf16.msra.mxu0 %v1359_v43 }
 0x288   :  { %v1272_v57 = vpop.f32.mrf.mxu0 }
 0x289   :  { %v297_v1 = vadd.f32 %v1272_v57, %v1188_v58 }
 0x28a   :  { %v288_v59 = vpop.f32.mrf.mxu0 }
 0x28b   :  { %v289_v60 = vadd.f32 %v1188_v58, %v288_v59  ;;  %v305_v2 = vmul.f32 0.5, %v297_v1 }
 0x28c   :  { %v1273_v61 = vpop.f32.mrf.mxu0 }
 0x28d   :  { %311 = vrot.lane.b32.xlu0 %v289_v60, %s1466_s22  ;;  %v300_v63 = vadd.f32 %v1273_v61, %v1188_v58  ;;  %v303_v3 = vmul.f32 0.5, %v289_v60 }
 0x28e   :  { %v291_v62 = vpop.f32.mrf.mxu0 }
 0x28f   :  { %v292_v0 = vadd.f32 %v1188_v58, %v291_v62  ;;  %v306_v4 = vmul.f32 0.5, %v300_v63 }
 0x291   :  { %313 = vrot.lane.b32.xlu1 %v292_v0, %s1466_s22  ;;  %317 = vrot.lane.b32.xlu0 %v300_v63, %s1466_s22  ;;  %v304_v5 = vmul.f32 0.5, %v292_v0 }
 0x295   :  { %315 = vrot.lane.b32.xlu1 %v297_v1, %s1466_s22  ;;  %575 = vrot.lane.b32.xlu0 %v292_v0, %s1467_s2 }
 0x299   :  { %568 = vrot.lane.b32.xlu1 %v289_v60, %s1467_s2  ;;  %597 = vrot.lane.b32.xlu0 %v300_v63, %s1467_s2 }
 0x29d   :  { %586 = vrot.lane.b32.xlu1 %v297_v1, %s1467_s2 }
 0x2ff   :  { %v312_v10 = vpop.permute.xlu0 %311 }
 0x300   :  { %v325_v12 = vmul.f32 %v312_v10, %v305_v2  ;;  %v326_v13 = vmul.f32 %v312_v10, %v306_v4  ;;  %v323_v14 = vmul.f32 %v312_v10, %v303_v3  ;;  %v324_v15 = vmul.f32 %v312_v10, %v304_v5 }
 0x302   :  { %v339_v16 = vpack.c.bf16 %v324_v15, %v323_v14  ;;  %v340_v17 = vpack.c.bf16 %v326_v13, %v325_v12 }
 0x303   :  { %v314_v18 = vpop.permute.xlu1 %313  ;;  %v318_v19 = vpop.permute.xlu0 %317 }
 0x304   :  { %v327_v20 = vmul.f32 %v314_v18, %v303_v3  ;;  %v328_v21 = vmul.f32 %v314_v18, %v304_v5  ;;  %v329_v22 = vmul.f32 %v314_v18, %v305_v2  ;;  %v330_v23 = vmul.f32 %v314_v18, %v306_v4  ;;  %1278 = vmatprep.mubr.msk.bf16.mxu1 %vm153_vm0, %v339_v16 }
 0x305   :  { %v335_v24 = vmul.f32 %v318_v19, %v303_v3  ;;  %v336_v26 = vmul.f32 %v318_v19, %v304_v5  ;;  %v337_v27 = vmul.f32 %v318_v19, %v305_v2  ;;  %v338_v28 = vmul.f32 %v318_v19, %v306_v4  ;;  %1279 = vmatmul.mubr.msk.bf16.vlgmr.msra.gmra.mxu1 %vm153_vm0, %v340_v17 }
 0x306   :  { %v341_v29 = vpack.c.bf16 %v328_v21, %v327_v20  ;;  %v342_v31 = vpack.c.bf16 %v330_v23, %v329_v22 }
 0x307   :  { %v316_v32 = vpop.permute.xlu1 %315  ;;  %v345_v33 = vpack.c.bf16 %v336_v26, %v335_v24  ;;  %v346_v35 = vpack.c.bf16 %v338_v28, %v337_v27 }
 0x308   :  { %v331_v36 = vmul.f32 %v316_v32, %v303_v3  ;;  %v332_v37 = vmul.f32 %v316_v32, %v304_v5  ;;  %v333_v38 = vmul.f32 %v316_v32, %v305_v2  ;;  %v334_v39 = vmul.f32 %v316_v32, %v306_v4  ;;  %1282 = vmatprep.mubr.msk.bf16.mxu1 %vm153_vm0, %v341_v29 }
 0x30a   :  { %v343_v40 = vpack.c.bf16 %v332_v37, %v331_v36  ;;  %v344_v41 = vpack.c.bf16 %v334_v39, %v333_v38 }
 0x30d   :  { %1283 = vmatmul.mubr.msk.bf16.gmra.mxu1 %vm153_vm0, %v342_v31 }
 0x30e   :  { %1286 = vmatprep.mubr.msk.bf16.mxu1 %vm153_vm0, %v343_v40 }
 0x315   :  { %1287 = vmatmul.mubr.msk.bf16.gmra.mxu1 %vm153_vm0, %v344_v41 }
 0x316   :  { %1290 = vmatprep.mubr.msk.bf16.mxu1 %vm153_vm0, %v345_v33 }
 0x31d   :  { %1291 = vmatmul.mubr.msk.bf16.gmra.mxu1 %vm153_vm0, %v346_v35 }
 0x3c5   :  { %v1280_v44 = vpop.f32.mrf.mxu1 }
 0x3c7   :  { %v417_v45 = vpop.f32.mrf.mxu1 }
 0x3c9   :  { %v1281_v46 = vpop.f32.mrf.mxu1 }
 0x3cb   :  { %v420_v47 = vpop.f32.mrf.mxu1 }
 0x3cd   :  { %v1284_v48 = vpop.f32.mrf.mxu1 }
 0x3ce   :  { %v482_v57 = vmax.f32 %v1280_v44, %v1284_v48 }
 0x3cf   :  { %v433_v49 = vpop.f32.mrf.mxu1 }
 0x3d0   :  { %v480_v60 = vmax.f32 %v417_v45, %v433_v49 }
 0x3d1   :  { %v1285_v50 = vpop.f32.mrf.mxu1 }
 0x3d2   :  { %v483_v61 = vmax.f32 %v1281_v46, %v1285_v50 }
 0x3d3   :  { %v436_v53 = vpop.f32.mrf.mxu1 }
 0x3d4   :  { %v481_v12 = vmax.f32 %v420_v47, %v436_v53 }
 0x3d5   :  { %v1288_v54 = vpop.f32.mrf.mxu1 }
 0x3d6   :  { %v486_v59 = vmax.f32 %v482_v57, %v1288_v54 }
 0x3d7   :  { %v449_v55 = vpop.f32.mrf.mxu1 }
 0x3d8   :  { %v484_v0 = vmax.f32 %v480_v60, %v449_v55 }
 0x3d9   :  { %v1289_v56 = vpop.f32.mrf.mxu1 }
 0x3da   :  { %v487_v1 = vmax.f32 %v483_v61, %v1289_v56 }
 0x3db   :  { %v452_v58 = vpop.f32.mrf.mxu1 }
 0x3dc   :  { %v485_v23 = vmax.f32 %v481_v12, %v452_v58 }
 0x3dd   :  { %v1292_v62 = vpop.f32.mrf.mxu1 }
 0x3de   :  { %v490_v63 = vmax.f32 %v486_v59, %v1292_v62 }
 0x3df   :  { %v465_v2 = vpop.f32.mrf.mxu1 }
 0x3e0   :  { %v494_v3 = vsub.f32 %v1280_v44, %v490_v63  ;;  %v506_v4 = vsub.f32 %v1284_v48, %v490_v63  ;;  %v518_v5 = vsub.f32 %v1288_v54, %v490_v63  ;;  %v530_v10 = vsub.f32 %v1292_v62, %v490_v63 }
 0x3e1   :  { %v488_v13 = vmax.f32 %v484_v0, %v465_v2  ;;  %v1293_v14 = vpop.f32.mrf.mxu1 }
 0x3e2   :  { %v500_v15 = vmul.f32 1.442695, %v494_v3  ;;  %v512_v16 = vmul.f32 1.442695, %v506_v4  ;;  %v524_v17 = vmul.f32 1.442695, %v518_v5  ;;  %v491_v18 = vmax.f32 %v487_v1, %v1293_v14 }
 0x3e3   :  { %v536_v19 = vmul.f32 1.442695, %v530_v10  ;;  %v492_v20 = vsub.f32 %v417_v45, %v488_v13  ;;  %v504_v21 = vsub.f32 %v433_v49, %v488_v13  ;;  %v516_v22 = vsub.f32 %v449_v55, %v488_v13  ;;  %v468_v27 = vpop.f32.mrf.mxu1 }
 0x3e4   :  { %1378 = vpow2.f32 %v500_v15  ;;  %v528_v24 = vsub.f32 %v465_v2, %v488_v13  ;;  %v495_v26 = vsub.f32 %v1281_v46, %v491_v18  ;;  %v507_v31 = vsub.f32 %v1285_v50, %v491_v18 }
 0x3e5   :  { %1380 = vpow2.f32 %v512_v16  ;;  %v496_v28 = vmul.f32 1.442695, %v492_v20  ;;  %v508_v29 = vmul.f32 1.442695, %v504_v21  ;;  %v520_v32 = vmul.f32 1.442695, %v516_v22  ;;  %v576_v21 = vpop.permute.xlu0 %575  ;;  %v569_v22 = vpop.permute.xlu1 %568 }
 0x3e6   :  { %1382 = vpow2.f32 %v524_v17  ;;  %v532_v33 = vmul.f32 1.442695, %v528_v24  ;;  %v519_v35 = vsub.f32 %v1289_v56, %v491_v18  ;;  %v531_v36 = vsub.f32 %v1293_v14, %v491_v18 }
 0x3e7   :  { %1384 = vpow2.f32 %v536_v19  ;;  %v489_v37 = vmax.f32 %v485_v23, %v468_v27  ;;  %v502_v38 = vmul.f32 1.442695, %v495_v26  ;;  %v514_v39 = vmul.f32 1.442695, %v507_v31 }
 0x3e8   :  { %1386 = vpow2.f32 %v496_v28  ;;  %v526_v41 = vmul.f32 1.442695, %v519_v35  ;;  %v538_v43 = vmul.f32 1.442695, %v531_v36 }
 0x3e9   :  { %1388 = vpow2.f32 %v508_v29  ;;  %v493_v40 = vsub.f32 %v420_v47, %v489_v37  ;;  %v505_v42 = vsub.f32 %v436_v53, %v489_v37  ;;  %v517_v44 = vsub.f32 %v452_v58, %v489_v37 }
 0x3ea   :  { %1390 = vpow2.f32 %v520_v32  ;;  %v529_v48 = vsub.f32 %v468_v27, %v489_v37 }
 0x3eb   :  { %1392 = vpow2.f32 %v532_v33  ;;  %v498_v45 = vmul.f32 1.442695, %v493_v40  ;;  %v510_v46 = vmul.f32 1.442695, %v505_v42  ;;  %v522_v49 = vmul.f32 1.442695, %v517_v44  ;;  %v587_v40 = vpop.permute.xlu1 %586 }
 0x3ec   :  { %1394 = vpow2.f32 %v502_v38  ;;  %v534_v54 = vmul.f32 1.442695, %v529_v48 }
 0x3ed   :  { %1396 = vpow2.f32 %v514_v39 }
 0x3ee   :  { %1398 = vpow2.f32 %v526_v41 }
 0x3ef   :  { %1400 = vpow2.f32 %v538_v43 }
 0x3f0   :  { %1402 = vpow2.f32 %v498_v45 }
 0x3f1   :  { %v1379_v50 = vpop.eup %1378  ;;  %1404 = vpow2.f32 %v510_v46 }
 0x3f2   :  { %v1381_v55 = vpop.eup %1380  ;;  %1406 = vpow2.f32 %v522_v49  ;;  %v573_v33 = vmul.f32 %v1379_v50, %v569_v22 }
 0x3f3   :  { %v1383_v47 = vpop.eup %1382  ;;  %v542_v56 = vadd.f32 %v1381_v55, %v1379_v50  ;;  %1408 = vpow2.f32 %v534_v54  ;;  %v580_v35 = vmul.f32 %v1381_v55, %v576_v21  ;;  %v598_v50 = vpop.permute.xlu0 %597 }
 0x3f4   :  { %v1644_v53 = vpop.eup %1384 }
 0x3f5   :  { %v1387_v57 = vpop.eup %1386  ;;  %v546_v59 = vadd.f32 %v1383_v47, %v542_v56  ;;  %v584_v44 = vadd.f32 %v580_v35, %v573_v33 }
 0x3f6   :  { %v1389_v58 = vpop.eup %1388  ;;  %v571_v28 = vmul.f32 %v1387_v57, %v569_v22 }
 0x3f7   :  { %v1391_v60 = vpop.eup %1390  ;;  %v540_v61 = vadd.f32 %v1389_v58, %v1387_v57  ;;  %v550_v2 = vadd.f32 %v1644_v53, %v546_v59  ;;  %v578_v31 = vmul.f32 %v1389_v58, %v576_v21  ;;  %v591_v58 = vmul.f32 %v1383_v47, %v587_v40 }
 0x3f8   :  { %v1393_v62 = vpop.eup %1392  ;;  %v589_v48 = vmul.f32 %v1391_v60, %v587_v40 }
 0x3f9   :  { %v1395_v63 = vpop.eup %1394  ;;  %v544_v0 = vadd.f32 %v1391_v60, %v540_v61  ;;  %v582_v41 = vadd.f32 %v578_v31, %v571_v28 }
 0x3fa   :  { %v1397_v1 = vpop.eup %1396  ;;  %v574_v24 = vmul.f32 %v1395_v63, %v569_v22 }
 0x3fb   :  { %v1399_v3 = vpop.eup %1398  ;;  %v543_v4 = vadd.f32 %v1397_v1, %v1395_v63  ;;  %v548_v5 = vadd.f32 %v1393_v62, %v544_v0  ;;  %v581_v26 = vmul.f32 %v1397_v1, %v576_v21  ;;  %v593_v61 = vadd.f32 %v589_v48, %v582_v41 }
 0x3fc   :  { %v1401_v10 = vpop.eup %1400  ;;  %v592_v45 = vmul.f32 %v1399_v3, %v587_v40 }
 0x3fd   :  { %v1403_v12 = vpop.eup %1402  ;;  %v547_v13 = vadd.f32 %v1399_v3, %v543_v4  ;;  %1410 = vrcp.f32 %v548_v5  ;;  %v585_v39 = vadd.f32 %v581_v26, %v574_v24  ;;  %v603_v0 = vmul.f32 %v1401_v10, %v598_v50 }
 0x3fe   :  { %v1405_v14 = vpop.eup %1404  ;;  %1412 = vrcp.f32 %v550_v2  ;;  %v572_v29 = vmul.f32 %v1403_v12, %v569_v22  ;;  %v602_v3 = vmul.f32 %v1644_v53, %v598_v50 }
 0x3ff   :  { %v551_v15 = vadd.f32 %v1401_v10, %v547_v13  ;;  %v541_v16 = vadd.f32 %v1405_v14, %v1403_v12  ;;  %v1407_v17 = vpop.eup %1406  ;;  %v579_v32 = vmul.f32 %v1405_v14, %v576_v21  ;;  %v596_v59 = vadd.f32 %v592_v45, %v585_v39 }
 0x400   :  { %v1409_v19 = vpop.eup %1408  ;;  %v590_v49 = vmul.f32 %v1407_v17, %v587_v40  ;;  %v600_v12 = vmul.f32 %v1393_v62, %v598_v50  ;;  %v691_v62 = vsub.s32 4, %v1545_v7 }
 0x401   :  { %1414 = vrcp.f32 %v551_v15  ;;  %v545_v18 = vadd.f32 %v1407_v17, %v541_v16  ;;  %v583_v42 = vadd.f32 %v579_v32, %v572_v29  ;;  %v601_v13 = vmul.f32 %v1409_v19, %v598_v50 }
 0x402   :  { %v607_v14 = vadd.f32 %v603_v0, %v596_v59  ;;  %v604_v16 = vadd.f32 %v600_v12, %v593_v61  ;;  %v1360_v0 = vld [vmem:[%s1753_s6 + $0x8] sm:$0xff]  }
 0x403   :  { %v549_v20 = vadd.f32 %v1409_v19, %v545_v18  ;;  %v594_v63 = vadd.f32 %v590_v49, %v583_v42  ;;  %1302 = vmatprep.subr.bf16.mxu0 %v1360_v0 }
 0x405   :  { %1416 = vrcp.f32 %v549_v20  ;;  %v605_v17 = vadd.f32 %v601_v13, %v594_v63 }
 0x40a   :  { %v1411_v23 = vpop.eup %1410 }
 0x40b   :  { %v1413_v27 = vpop.eup %1412  ;;  %v556_v36 = vmul.f32 %v1411_v23, %v548_v5 }
 0x40c   :  { %v558_v38 = vmul.f32 %v1413_v27, %v550_v2  ;;  %v595_v2 = vadd.f32 %v591_v58, %v584_v44 }
 0x40d   :  { %v560_v46 = vsub.f32 2.0, %v556_v36 }
 0x40e   :  { %v1415_v37 = vpop.eup %1414  ;;  %v562_v57 = vsub.f32 2.0, %v558_v38  ;;  %v606_v47 = vadd.f32 %v602_v3, %v595_v2 }
 0x40f   :  { %v559_v43 = vmul.f32 %v1415_v37, %v551_v15  ;;  %v564_v5 = vmul.f32 %v1411_v23, %v560_v46  ;;  %v692_v23 = vrot.slane %v1613_v30, %v691_v62 }
 0x410   :  { %v566_v60 = vmul.f32 %v1413_v27, %v562_v57 }
 0x411   :  { %v563_v54 = vsub.f32 2.0, %v559_v43  ;;  %v608_v21 = vmul.f32 %v604_v16, %v564_v5 }
 0x412   :  { %v1417_v56 = vpop.eup %1416  ;;  %v610_v22 = vmul.f32 %v606_v47, %v566_v60 }
 0x413   :  { %v557_v55 = vmul.f32 %v1417_v56, %v549_v20  ;;  %v567_v1 = vmul.f32 %v1415_v37, %v563_v54 }
 0x415   :  { %v561_v4 = vsub.f32 2.0, %v557_v55  ;;  %v611_v18 = vmul.f32 %v607_v14, %v567_v1  ;;  %v1361_v1 = vld [vmem:[%s1753_s6] sm:$0xff]  }
 0x417   :  { %v565_v15 = vmul.f32 %v1417_v56, %v561_v4  ;;  %v613_v10 = vpack.c.bf16 %v611_v18, %v610_v22  ;;  %v759_v22 = vsub.s32 3, %v1545_v7 }
 0x419   :  { %v609_v20 = vmul.f32 %v605_v17, %v565_v15 }
 0x41b   :  { %v612_v24 = vpack.c.bf16 %v609_v20, %v608_v21  ;;  %v752_v20 = vrot.slane %v1613_v30, %v1557_v11 }
 0x41d   :  { %1298 = vmatprep.mubr.msk.bf16.mxu0 %vm153_vm0, %v612_v24 }
 0x41e   :  { %1299 = vmatmul.mubr.msk.bf16.vlgmr.msra.gmra.mxu0 %vm153_vm0, %v613_v10 }
 0x41f   :  { %1303 = vmatpush3.bf16.msra.mxu0 %v1360_v0 }
 0x420   :  { %1304 = vmatprep.subr.bf16.mxu0 %v1361_v1 }
 0x423   :  { %1305 = vmatpush3.bf16.msra.mxu0 %v1361_v1 }
 0x4de   :  { %v1300_v19 = vpop.f32.mrf.mxu0 }
 0x4df   :  { %v687_v32 = vadd.f32 %v1300_v19, %v1588_v51  ;;  %v760_v19 = vrot.slane %v1613_v30, %v759_v22 }
 0x4e0   :  { %v670_v53 = vpop.f32.mrf.mxu0 }
 0x4e1   :  { %v685_v26 = vadd.f32 %v670_v53, %v1567_v25  ;;  %v1664_v38 = vadd.f32 %v692_v23, %v687_v32 }
 0x4e2   :  { %v1301_v27 = vpop.f32.mrf.mxu0 }
 0x4e3   :  { %v1653_v28 = vadd.f32 %v692_v23, %v685_v26  ;;  %v688_v29 = vadd.f32 %v1301_v27, %v1590_v52  ;;  %v703_v51 = vsel %vm153_vm0, %v1664_v38, 0.0 }
 0x4e4   :  { %v673_v31 = vpop.f32.mrf.mxu0 }
 0x4e5   :  { %v1657_v33 = vadd.f32 %v692_v23, %v688_v29  ;;  %v686_v35 = vadd.f32 %v673_v31, %v1578_v34  ;;  %v697_v36 = vsel %vm153_vm0, %v1653_v28, 0.0 }
 0x4e6   :  { %698 = vadd.xlane.f32.xlu1 %v697_v36 }
 0x4e7   :  { %v1662_v37 = vadd.f32 %v692_v23, %v686_v35  ;;  %v706_v25 = vsel %vm153_vm0, %v1657_v33, 0.0 }
 0x4e9   :  { %v700_v52 = vsel %vm153_vm0, %v1662_v37, 0.0 }
 0x4ea   :  { %707 = vadd.xlane.f32.xlu1 %v706_v25  ;;  %701 = vadd.xlane.f32.xlu0 %v700_v52 }
 0x4ee   :  { %704 = vadd.xlane.f32.xlu0 %v703_v51 }
 0x56f   :  { %v699_v34 = vpop.xlane.xlu1 %698 }
 0x570   :  { %v709_v39 = vmul.f32 0.03125, %v699_v34  ;;  %v1362_v34 = vld [vmem:[%s1755_s8 + $0x38] sm:$0xff]  }
 0x571   :  { %1310 = vmatprep.subr.bf16.mxu1 %v1362_v34 }
 0x572   :  { %v713_v40 = vsub.f32 %v1653_v28, %v709_v39  ;;  %1311 = vmatpush3.bf16.msra.mxu1 %v1362_v34  ;;  %v1363_v39 = vld [vmem:[%s1755_s8 + $0x30] sm:$0xff]   ;;  %v1002_v34 = vsub.s32 5, %v1545_v7 }
 0x573   :  { %v708_v41 = vpop.xlane.xlu1 %707  ;;  %v702_v42 = vpop.xlane.xlu0 %701  ;;  %1312 = vmatprep.subr.bf16.mxu1 %v1363_v39 }
 0x574   :  { %v712_v43 = vmul.f32 0.03125, %v708_v41  ;;  %v710_v44 = vmul.f32 0.03125, %v702_v42  ;;  %v717_v45 = vmul.f32 %v713_v40, %v713_v40  ;;  %v1365_v41 = vld [vmem:[%s1755_s8 + $0x20] sm:$0xff]   ;;  %v1366_v42 = vld [vmem:[%s1755_s8 + $0x18] sm:$0xff]  }
 0x576   :  { %v716_v46 = vsub.f32 %v1657_v33, %v712_v43  ;;  %v714_v48 = vsub.f32 %v1662_v37, %v710_v44  ;;  %v721_v49 = vsel %vm153_vm0, %v717_v45, 0.0  ;;  %1313 = vmatpush3.bf16.msra.mxu1 %v1363_v39  ;;  %v1367_v43 = vld [vmem:[%s1755_s8 + $0x10] sm:$0xff]   ;;  %v1368_v44 = vld [vmem:[%s1755_s8 + $0x8] sm:$0xff]   ;;  %v1369_v45 = vld [vmem:[%s1755_s8] sm:$0xff]  }
 0x577   :  { %722 = vadd.xlane.f32.xlu0 %v721_v49  ;;  %v705_v54 = vpop.xlane.xlu0 %704 }
 0x578   :  { %v711_v56 = vmul.f32 0.03125, %v705_v54  ;;  %v718_v57 = vmul.f32 %v714_v48, %v714_v48  ;;  %v720_v50 = vmul.f32 %v716_v46, %v716_v46 }
 0x57a   :  { %v715_v58 = vsub.f32 %v1664_v38, %v711_v56  ;;  %v724_v59 = vsel %vm153_vm0, %v718_v57, 0.0  ;;  %v730_v61 = vsel %vm153_vm0, %v720_v50, 0.0 }
 0x57b   :  { %725 = vadd.xlane.f32.xlu1 %v724_v59 }
 0x57c   :  { %v719_v55 = vmul.f32 %v715_v58, %v715_v58 }
 0x57e   :  { %v727_v63 = vsel %vm153_vm0, %v719_v55, 0.0 }
 0x57f   :  { %731 = vadd.xlane.f32.xlu1 %v730_v61  ;;  %728 = vadd.xlane.f32.xlu0 %v727_v63 }
 0x600   :  { %v723_v2 = vpop.xlane.xlu0 %722 }
 0x601   :  { %v733_v4 = vmul.f32 0.03125, %v723_v2 }
 0x603   :  { %v737_v5 = vadd.f32 1e-05, %v733_v4 }
 0x604   :  { %v726_v12 = vpop.xlane.xlu1 %725 }
 0x605   :  { %1418 = vrsqrt.f32 %v737_v5  ;;  %v734_v13 = vmul.f32 0.03125, %v726_v12 }
 0x607   :  { %v738_v3 = vadd.f32 1e-05, %v734_v13 }
 0x608   :  { %v732_v60 = vpop.xlane.xlu1 %731  ;;  %v729_v14 = vpop.xlane.xlu0 %728 }
 0x609   :  { %1420 = vrsqrt.f32 %v738_v3  ;;  %v736_v15 = vmul.f32 0.03125, %v732_v60  ;;  %v735_v16 = vmul.f32 0.03125, %v729_v14 }
 0x60b   :  { %v740_v17 = vadd.f32 1e-05, %v736_v15  ;;  %v739_v47 = vadd.f32 1e-05, %v735_v16 }
 0x60d   :  { %1422 = vrsqrt.f32 %v740_v17 }
 0x60e   :  { %1424 = vrsqrt.f32 %v739_v47 }
 0x612   :  { %v1419_v18 = vpop.eup %1418 }
 0x613   :  { %v745_v21 = vmul.f32 %v1419_v18, %v713_v40  ;;  %v1364_v40 = vld [vmem:[%s1755_s8 + $0x28] sm:$0xff]  }
 0x614   :  { %1314 = vmatprep.subr.bf16.mxu1 %v1364_v40 }
 0x615   :  { %v753_v62 = vmul.f32 %v752_v20, %v745_v21  ;;  %1315 = vmatpush3.bf16.msra.mxu1 %v1364_v40 }
 0x616   :  { %v1421_v24 = vpop.eup %1420  ;;  %1316 = vmatprep.subr.bf16.mxu1 %v1365_v41 }
 0x617   :  { %v746_v10 = vmul.f32 %v1421_v24, %v714_v48  ;;  %v761_v29 = vadd.f32 %v760_v19, %v753_v62 }
 0x619   :  { %v754_v53 = vmul.f32 %v752_v20, %v746_v10  ;;  %1317 = vmatpush3.bf16.msra.mxu1 %v1365_v41 }
 0x61a   :  { %v1423_v23 = vpop.eup %1422  ;;  %1318 = vmatprep.subr.bf16.mxu1 %v1366_v42 }
 0x61b   :  { %v1425_v26 = vpop.eup %1424  ;;  %v748_v27 = vmul.f32 %v1423_v23, %v716_v46  ;;  %v762_v31 = vadd.f32 %v760_v19, %v754_v53  ;;  %v1207_v46 = vld [vmem:[%s1754_s7] ss:$0 sm:$0xff] }
 0x61c   :  { %v747_v32 = vmul.f32 %v1425_v26, %v715_v58 }
 0x61d   :  { %v765_v35 = vpack.c.bf16 %v762_v31, %v761_v29  ;;  %v756_v36 = vmul.f32 %v752_v20, %v748_v27  ;;  %1319 = vmatpush3.bf16.msra.mxu1 %v1366_v42 }
 0x61e   :  { %v755_v25 = vmul.f32 %v752_v20, %v747_v32  ;;  %1320 = vmatprep.subr.bf16.mxu1 %v1367_v43 }
 0x61f   :  { %1306 = vmatprep.mubr.msk.bf16.mxu0 %vm153_vm0, %v765_v35  ;;  %v764_v11 = vadd.f32 %v760_v19, %v756_v36 }
 0x620   :  { %v763_v52 = vadd.f32 %v760_v19, %v755_v25 }
 0x621   :  { %1321 = vmatpush3.bf16.msra.mxu1 %v1367_v43  ;;  %v1003_v43 = vrot.slane %v1613_v30, %v1002_v34 }
 0x622   :  { %v766_v51 = vpack.c.bf16 %v764_v11, %v763_v52  ;;  %1322 = vmatprep.subr.bf16.mxu1 %v1368_v44 }
 0x624   :  { %1307 = vmatmul.mubr.msk.bf16.vlgmr.msra.gmra.mxu0 %vm153_vm0, %v766_v51 }
 0x625   :  { %1323 = vmatpush3.bf16.msra.mxu1 %v1368_v44 }
 0x626   :  { %1324 = vmatprep.subr.bf16.mxu1 %v1369_v45 }
 0x629   :  { %1325 = vmatpush3.bf16.msra.mxu1 %v1369_v45 }
 0x6e4   :  { %v1308_v48 = vpop.f32.mrf.mxu0 }
 0x6e5   :  { %v839_v49 = vadd.f32 %v1308_v48, %v1207_v46 }
 0x6e6   :  { %v830_v54 = vpop.f32.mrf.mxu0 }
 0x6e7   :  { %v851_v56 = vmul.f32 0.044715, %v839_v49  ;;  %v831_v57 = vadd.f32 %v1207_v46, %v830_v54  ;;  %v847_v32 = vmul.f32 0.5, %v839_v49 }
 0x6e8   :  { %v1309_v58 = vpop.f32.mrf.mxu0 }
 0x6e9   :  { %v855_v59 = vmul.f32 %v851_v56, %v839_v49  ;;  %v849_v50 = vmul.f32 0.044715, %v831_v57  ;;  %v842_v55 = vadd.f32 %v1309_v58, %v1207_v46  ;;  %v845_v27 = vmul.f32 0.5, %v831_v57 }
 0x6ea   :  { %v833_v61 = vpop.f32.mrf.mxu0 }
 0x6eb   :  { %v859_v63 = vmul.f32 %v855_v59, %v839_v49  ;;  %v853_v0 = vmul.f32 %v849_v50, %v831_v57  ;;  %v852_v1 = vmul.f32 0.044715, %v842_v55  ;;  %v834_v2 = vadd.f32 %v1207_v46, %v833_v61 }
 0x6ec   :  { %v848_v23 = vmul.f32 0.5, %v842_v55 }
 0x6ed   :  { %v863_v4 = vadd.f32 %v859_v63, %v839_v49  ;;  %v857_v5 = vmul.f32 %v853_v0, %v831_v57  ;;  %v856_v12 = vmul.f32 %v852_v1, %v842_v55  ;;  %v850_v13 = vmul.f32 0.044715, %v834_v2 }
 0x6ee   :  { %v846_v29 = vmul.f32 0.5, %v834_v2 }
 0x6ef   :  { %v867_v3 = vmul.f32 0.7978846, %v863_v4  ;;  %v860_v60 = vmul.f32 %v856_v12, %v842_v55  ;;  %v861_v14 = vadd.f32 %v857_v5, %v831_v57  ;;  %v854_v15 = vmul.f32 %v850_v13, %v834_v2 }
 0x6f1   :  { %v864_v16 = vadd.f32 %v860_v60, %v842_v55  ;;  %v865_v17 = vmul.f32 0.7978846, %v861_v14  ;;  %v858_v47 = vmul.f32 %v854_v15, %v834_v2  ;;  %1426 = vtanh.f32 %v867_v3 }
 0x6f3   :  { %v868_v18 = vmul.f32 0.7978846, %v864_v16  ;;  %v862_v21 = vadd.f32 %v858_v47, %v834_v2  ;;  %1428 = vtanh.f32 %v865_v17  ;;  %v1085_v47 = vadd.s32 24, %v1545_v7 }
 0x6f5   :  { %1430 = vtanh.f32 %v868_v18  ;;  %v866_v20 = vmul.f32 0.7978846, %v862_v21  ;;  %v1087_v18 = vand.u32 127, %v68_v6  ;;  %v1468_v21 = vmov 0.0  }
 0x6f6   :  { %1330 = vmatprep.subr.mxu0 %v1468_v21  ;;  %1338 = vmatprep.mubr.msk.f32.mxu0 %vm1469_vm2, %v1468_v21 }
 0x6f7   :  { %1432 = vtanh.f32 %v866_v20  ;;  %v1084_v20 = vadd.s32 16, %v1545_v7  ;;  %vm1091_vm1 = vcmp.eq.s32.totalorder %v1085_v47, %v1087_v18  ;;  %vm1088_vm5 = vcmp.eq.s32.totalorder %v1545_v7, %v1087_v18 }
 0x6f9   :  { %vm1090_vm3 = vcmp.eq.s32.totalorder %v1084_v20, %v1087_v18 }
 0x6fe   :  { %v1427_v22 = vpop.eup %1426 }
 0x6ff   :  { %v875_v26 = vadd.f32 1.0, %v1427_v22  ;;  %v1083_v22 = vadd.s32 8, %v1545_v7  ;;  %v1008_v7 = vld [vmem:[%s1757_s10] sm:$0x3]  ;;  %s1471_s10 = smov [#allocation2]  }
 0x700   :  { %v1429_v24 = vpop.eup %1428  ;;  %s1180_s2 = sshll.u32 %s1471_s10, 4  ;;  %s1181_s2 = int_to_ptr.vmem [resolvable:$true] %s1180_s2 }
 0x701   :  { %v873_v19 = vadd.f32 1.0, %v1429_v24  ;;  %v879_v11 = vmul.f32 %v875_v26, %v847_v32  ;;  %v1470_v24 = vmov 1.0   ;;  %vm1089_vm4 = vcmp.eq.s32.totalorder %v1083_v22, %v1087_v18  ;;  %s1442_s4 = scalar_lea.vmem %s1181_s2, 128  ;;  %p1447_p1 = scmp.lt.s32.totalorder %s1181_s2, %s1181_s2 }
 0x702   :  { %v1431_v10 = vpop.eup %1430  ;;  %1331 = vmatpush3.msk.msra.mxu0 %vm1091_vm1, %v1470_v24  ;;  %p1443_p0 = scmp.ne.s32.totalorder %s1181_s2, %s1442_s4  ;;  %p1448_p2 = scmp.lt.s32.totalorder %s1442_s4, %s1442_s4 }
 0x703   :  { %v876_v62 = vadd.f32 1.0, %v1431_v10  ;;  %v877_v36 = vmul.f32 %v873_v19, %v845_v27  ;;  %1332 = vmatprep.subr.mxu0 %v1468_v21 }
 0x704   :  { %v1433_v53 = vpop.eup %1432  ;;  %1333 = vmatpush3.msk.msra.mxu0 %vm1090_vm3, %v1470_v24  ;;  %p1449_p3 = por %p1448_p2, %p1447_p1 }
 0x705   :  { %v874_v31 = vadd.f32 1.0, %v1433_v53  ;;  %v880_v35 = vmul.f32 %v876_v62, %v848_v23  ;;  %1334 = vmatprep.subr.mxu0 %v1468_v21 }
 0x706   :  { %1335 = vmatpush3.msk.msra.mxu0 %vm1089_vm4, %v1470_v24  ;;  %p1450_p4 = pnand %p1449_p3, %p1443_p0 }
 0x707   :  { %v878_v25 = vmul.f32 %v874_v31, %v846_v29  ;;  %v882_v51 = vpack.c.bf16 %v880_v35, %v879_v11  ;;  %1336 = vmatprep.subr.mxu0 %v1468_v21 }
 0x708   :  { %1337 = vmatpush3.msk.msra.mxu0 %vm1088_vm5, %v1470_v24 }
 0x709   :  { %v881_v52 = vpack.c.bf16 %v878_v25, %v877_v36  ;;  %v1064_v25 = vrot.slane %v1008_v7, %v1551_v9 }
 0x70b   :  { %1326 = vmatprep.mubr.bf16.mxu1 %v881_v52 }
 0x70c   :  { %1327 = vmatmul.mubr.bf16.vlgmr.msra.gmra.mxu1 %v882_v51 }
 0x7cc   :  { %v1328_v39 = vpop.f32.mrf.mxu1 }
 0x7cd   :  { %v998_v41 = vadd.f32 %v1328_v39, %v1664_v38 }
 0x7ce   :  { %v981_v40 = vpop.f32.mrf.mxu1 }
 0x7cf   :  { %v996_v42 = vadd.f32 %v981_v40, %v1653_v28  ;;  %v1006_v56 = vadd.f32 %v1003_v43, %v998_v41  ;;  %v1072_v41 = vrot.slane %v1008_v7, %v1548_v8 }
 0x7d0   :  { %v1329_v44 = vpop.f32.mrf.mxu1 }
 0x7d1   :  { %v1004_v45 = vadd.f32 %v1003_v43, %v996_v42  ;;  %v999_v48 = vadd.f32 %v1329_v44, %v1657_v33  ;;  %v1015_v58 = vsel %vm153_vm0, %v1006_v56, 0.0 }
 0x7d2   :  { %v984_v46 = vpop.f32.mrf.mxu1 }
 0x7d3   :  { %v997_v49 = vadd.f32 %v984_v46, %v1662_v37  ;;  %v1009_v54 = vsel %vm153_vm0, %v1004_v45, 0.0  ;;  %v1007_v59 = vadd.f32 %v1003_v43, %v999_v48 }
 0x7d4   :  { %1010 = vadd.xlane.f32.xlu0 %v1009_v54 }
 0x7d5   :  { %v1005_v57 = vadd.f32 %v1003_v43, %v997_v49  ;;  %v1018_v30 = vsel %vm153_vm0, %v1007_v59, 0.0 }
 0x7d7   :  { %v1012_v38 = vsel %vm153_vm0, %v1005_v57, 0.0 }
 0x7d8   :  { %1016 = vadd.xlane.f32.xlu0 %v1015_v58  ;;  %1013 = vadd.xlane.f32.xlu1 %v1012_v38 }
 0x7dc   :  { %1019 = vadd.xlane.f32.xlu1 %v1018_v30 }
 0x85d   :  { %v1011_v28 = vpop.xlane.xlu0 %1010 }
 0x85e   :  { %v1021_v50 = vmul.f32 0.03125, %v1011_v28 }
 0x860   :  { %v1025_v33 = vsub.f32 %v1004_v45, %v1021_v50 }
 0x861   :  { %v1017_v55 = vpop.xlane.xlu0 %1016  ;;  %v1014_v37 = vpop.xlane.xlu1 %1013 }
 0x862   :  { %v1023_v61 = vmul.f32 0.03125, %v1017_v55  ;;  %v1022_v63 = vmul.f32 0.03125, %v1014_v37  ;;  %v1029_v0 = vmul.f32 %v1025_v33, %v1025_v33 }
 0x864   :  { %v1027_v1 = vsub.f32 %v1006_v56, %v1023_v61  ;;  %v1026_v2 = vsub.f32 %v1005_v57, %v1022_v63  ;;  %v1033_v4 = vsel %vm153_vm0, %v1029_v0, 0.0 }
 0x865   :  { %1034 = vadd.xlane.f32.xlu0 %v1033_v4  ;;  %v1020_v5 = vpop.xlane.xlu1 %1019 }
 0x866   :  { %v1024_v12 = vmul.f32 0.03125, %v1020_v5  ;;  %v1031_v13 = vmul.f32 %v1027_v1, %v1027_v1  ;;  %v1030_v3 = vmul.f32 %v1026_v2, %v1026_v2 }
 0x868   :  { %v1028_v60 = vsub.f32 %v1007_v59, %v1024_v12  ;;  %v1039_v14 = vsel %vm153_vm0, %v1031_v13, 0.0  ;;  %v1036_v15 = vsel %vm153_vm0, %v1030_v3, 0.0 }
 0x869   :  { %1040 = vadd.xlane.f32.xlu0 %v1039_v14  ;;  %1037 = vadd.xlane.f32.xlu1 %v1036_v15 }
 0x86a   :  { %v1032_v16 = vmul.f32 %v1028_v60, %v1028_v60 }
 0x86c   :  { %v1042_v17 = vsel %vm153_vm0, %v1032_v16, 0.0 }
 0x86d   :  { %1043 = vadd.xlane.f32.xlu1 %v1042_v17 }
 0x8ee   :  { %v1035_v6 = vpop.xlane.xlu0 %1034 }
 0x8ef   :  { %v1045_v10 = vmul.f32 0.03125, %v1035_v6 }
 0x8f1   :  { %v1049_v62 = vadd.f32 1e-05, %v1045_v10 }
 0x8f2   :  { %v1041_v19 = vpop.xlane.xlu0 %1040  ;;  %v1038_v53 = vpop.xlane.xlu1 %1037 }
 0x8f3   :  { %1434 = vrsqrt.f32 %v1049_v62  ;;  %v1047_v23 = vmul.f32 0.03125, %v1041_v19  ;;  %v1046_v26 = vmul.f32 0.03125, %v1038_v53 }
 0x8f5   :  { %v1051_v27 = vadd.f32 1e-05, %v1047_v23  ;;  %v1050_v29 = vadd.f32 1e-05, %v1046_v26 }
 0x8f6   :  { %v1044_v31 = vpop.xlane.xlu1 %1043 }
 0x8f7   :  { %1436 = vrsqrt.f32 %v1051_v27  ;;  %v1048_v32 = vmul.f32 0.03125, %v1044_v31 }
 0x8f8   :  { %1438 = vrsqrt.f32 %v1050_v29 }
 0x8f9   :  { %v1052_v35 = vadd.f32 1e-05, %v1048_v32 }
 0x8fb   :  { %1440 = vrsqrt.f32 %v1052_v35 }
 0x900   :  { %v1435_v36 = vpop.eup %1434 }
 0x901   :  { %v1057_v11 = vmul.f32 %v1435_v36, %v1025_v33 }
 0x903   :  { %v1065_v39 = vmul.f32 %v1064_v25, %v1057_v11 }
 0x904   :  { %v1437_v52 = vpop.eup %1436 }
 0x905   :  { %v1439_v51 = vpop.eup %1438  ;;  %v1059_v34 = vmul.f32 %v1437_v52, %v1027_v1  ;;  %v1073_v46 = vadd.f32 %v1072_v41, %v1065_v39 }
 0x906   :  { %v1058_v40 = vmul.f32 %v1439_v51, %v1026_v2 }
 0x907   :  { %v1067_v43 = vmul.f32 %v1064_v25, %v1059_v34 }
 0x908   :  { %v1441_v42 = vpop.eup %1440  ;;  %v1066_v44 = vmul.f32 %v1064_v25, %v1058_v40 }
 0x909   :  { %v1060_v45 = vmul.f32 %v1441_v42, %v1028_v60  ;;  %v1075_v54 = vadd.f32 %v1072_v41, %v1067_v43 }
 0x90a   :  { %v1074_v48 = vadd.f32 %v1072_v41, %v1066_v44 }
 0x90b   :  { %v1068_v49 = vmul.f32 %v1064_v25, %v1060_v45 }
 0x90c   :  { %v1077_v56 = vadd.f32 %v1074_v48, %v1073_v46 }
 0x90d   :  { %v1076_v57 = vadd.f32 %v1072_v41, %v1068_v49 }
 0x90e   :  { %v1078_v58 = vadd.f32 %v1077_v56, %v1075_v54 }
 0x910   :  { %v1079_v9 = vadd.f32 %v1078_v58, %v1076_v57 }
 0x912   :  { %v1080_v38 = vmul.f32 0.25, %v1079_v9 }
 0x914   :  { %1339 = vmatmul.mubr.msk.f32.vlgmr.msra.gmra.mxu0 %vm153_vm0, %v1080_v38 }
 0x9d4   :  { %v1169_v59 = vpop.f32.mrf.mxu0 }
 0x9d5   :  { %1173 = vst [vmem:[#allocation2] sm:$0xff] %v1169_v59 }
 0x9d6   :  { %v1340_v8 = vpop.f32.mrf.mxu0 }
 0x9d7   :  { %1453 = shalt.err (!%p1450_p4)
}
 0x9d8   :  { %1183 = dma.vmem_to_hbm [thread:$0]  %s1181_s2, 128, %s1758_s11, [#allocation3]  }
 0x9d9   :  { %1462 = dma.done.wait [#allocation3], 128  }
 0x9da   :  { %1463 = vsyncadd [#allocation3], 4294967168 }
 0x9db   :  { %1187 = vsyncpa [#allocation3], 1 }

</bundles_post_ra>
